<compile_context>
chip_gen: v6e
topology: v6e:2x2x1
jax: 0.10.0
libtpu: 0.0.40
codegen_flags: <defaults>
</compile_context>

<pallas_src>
import functools

import numpy as np
import jax
import jax.numpy as jnp
from jax.experimental import pallas as pl
from jax.experimental.pallas import tpu as pltpu

F32 = jnp.float32
BF16 = jnp.bfloat16


# ----------------------------------------------------------------------------
# Helper functions reproducing the Pangu utilities used by the module
# ----------------------------------------------------------------------------
def get_earth_position_index(window_size):
    wpl, wlat, wlon = window_size
    coords_zi = np.arange(wpl)
    coords_zj = -np.arange(wpl) * wpl
    coords_hi = np.arange(wlat)
    coords_hj = -np.arange(wlat) * wlat
    coords_w = np.arange(wlon)

    coords_1 = np.stack(np.meshgrid(coords_zi, coords_hi, coords_w, indexing="ij"))
    coords_2 = np.stack(np.meshgrid(coords_zj, coords_hj, coords_w, indexing="ij"))
    coords_flatten_1 = coords_1.reshape(3, -1)
    coords_flatten_2 = coords_2.reshape(3, -1)
    coords = coords_flatten_1[:, :, None] - coords_flatten_2[:, None, :]
    coords = coords.transpose(1, 2, 0).copy()

    coords[:, :, 2] += wlon - 1
    coords[:, :, 1] *= 2 * wlon - 1
    coords[:, :, 0] *= (2 * wlon - 1) * wlat * wlat
    return coords.sum(-1).astype(np.int32)  # (N, N)


def get_pad3d(input_resolution, window_size):
    Pl, Lat, Lon = input_resolution
    wpl, wlat, wlon = window_size
    pl_rem, lat_rem, lon_rem = Pl % wpl, Lat % wlat, Lon % wlon
    left = right = top = bottom = front = back = 0
    if pl_rem:
        pad = wpl - pl_rem
        front = pad // 2
        back = pad - front
    if lat_rem:
        pad = wlat - lat_rem
        top = pad // 2
        bottom = pad - top
    if lon_rem:
        pad = wlon - lon_rem
        left = pad // 2
        right = pad - left
    return (left, right, top, bottom, front, back)


def window_partition(x, window_size):
    # x: (B, Pl, Lat, Lon, C) -> (B*nLon, nPl*nLat, wpl, wlat, wlon, C)
    B, Pl, Lat, Lon, C = x.shape
    wpl, wlat, wlon = window_size
    x = x.reshape(B, Pl // wpl, wpl, Lat // wlat, wlat, Lon // wlon, wlon, C)
    win = jnp.transpose(x, (0, 5, 1, 3, 2, 4, 6, 7)).reshape(
        -1, (Pl // wpl) * (Lat // wlat), wpl, wlat, wlon, C)
    return win


def window_reverse(windows, window_size, Pl, Lat, Lon):
    wpl, wlat, wlon = window_size
    B = windows.shape[0] // (Lon // wlon)
    x = windows.reshape(B, Lon // wlon, Pl // wpl, Lat // wlat, wpl, wlat, wlon, -1)
    x = jnp.transpose(x, (0, 2, 4, 3, 5, 1, 6, 7)).reshape(B, Pl, Lat, Lon, -1)
    return x


# ----------------------------------------------------------------------------
# Tile-size selection
# ----------------------------------------------------------------------------
def _vmem_capacity_bytes():
    try:
        cap = int(getattr(pltpu.get_tpu_info(), "vmem_capacity_bytes", 0))
        if cap > 0:
            return cap
    except Exception:
        pass
    return 64 * 1024 * 1024  # conservative (v7x per-TC)


def _row_tile(M, target=512):
    """Largest multiple-of-8 row tile <= min(target, ~M/2).

    Capping at ~M/2 keeps the (parallel) row grid at extent >= 2 so both v7x
    TensorCores get work; prefer exact divisors, otherwise Pallas masks the tail.
    """
    cap = min(target, max(8, ((M + 1) // 2 // 8) * 8))
    for t in range(cap, 7, -8):
        if M % t == 0:
            return t
    return cap


def _attn_vmem_estimate(wt, N, C, num_heads):
    """Dtype-aware VMEM estimate for one attention program.

    Counts double-buffered (x2) blocked operands, double-buffered constants,
    the head-output scratch, and the in-kernel temporaries.
    """
    blocked = 2 * (wt * N * C * 2               # x block (bf16)
                   + num_heads * wt * N * N * 2  # bias block (bf16)
                   + wt * N * C * 2)             # out block (bf16)
    consts = 2 * (C * 3 * C * 2 + 3 * C * 4      # qkv_w (bf16), qkv_b (f32)
                  + C * C * 2 + C * 4)           # proj_w (bf16), proj_b (f32)
    temps = (wt * N * 3 * C * (4 + 2)            # qkv f32 result + bf16 copy
             + wt * N * N * (4 + 4 + 2)          # scores f32, probs f32, probs bf16
             + wt * N * C * (4 + 2 + 4))         # head scratch f32, bf16 cast, proj out f32
    return blocked + consts + temps


def _pick_window_tile(nW, N, C, num_heads, budget_bytes):
    """Largest divisor of nW whose estimated VMEM footprint fits the budget."""
    best = 1
    for wt in range(1, nW + 1):
        if nW % wt == 0 and _attn_vmem_estimate(wt, N, C, num_heads) <= budget_bytes:
            best = wt
    return best, _attn_vmem_estimate(best, N, C, num_heads)


# ----------------------------------------------------------------------------
# In-kernel math helpers
# ----------------------------------------------------------------------------
def _erf(x):
    # Abramowitz & Stegun 7.1.26 (|err| < 1.5e-7): GELU matches PyTorch's exact
    # erf-based nn.GELU() to ~f32 precision using only exp / mul / add.
    a1, a2, a3, a4, a5 = (0.254829592, -0.284496736, 1.421413741,
                          -1.453152027, 1.061405429)
    pp = 0.3275911
    z = jnp.abs(x)
    t = 1.0 / (1.0 + pp * z)
    poly = ((((a5 * t + a4) * t + a3) * t + a2) * t + a1) * t
    y = 1.0 - poly * jnp.exp(-z * z)
    return jnp.where(x >= 0, y, -y)


def _gelu(x):
    return 0.5 * x * (1.0 + _erf(x * 0.7071067811865476))


def _layernorm(x, gamma, beta, eps):
    mean = jnp.mean(x, axis=-1, keepdims=True)
    xc = x - mean
    var = jnp.mean(xc * xc, axis=-1, keepdims=True)
    return xc * jax.lax.rsqrt(var + eps) * gamma + beta


# ----------------------------------------------------------------------------
# Kernel A: LayerNorm1 (C-wide bf16 output that feeds the window glue + kernel B)
# ----------------------------------------------------------------------------
def _ln_kernel(x_ref, g_ref, b_ref, o_ref, *, eps):
    xn = _layernorm(x_ref[...].astype(F32), g_ref[...], b_ref[...], eps)
    o_ref[...] = xn.astype(o_ref.dtype)


def layer_norm(x2d, gamma, beta, *, eps=1e-5, out_dtype=BF16):
    M, C = x2d.shape
    tm = _row_tile(M)
    return pl.pallas_call(
        functools.partial(_ln_kernel, eps=eps),
        out_shape=jax.ShapeDtypeStruct((M, C), out_dtype),
        grid=(pl.cdiv(M, tm),),
        in_specs=[pl.BlockSpec((tm, C), lambda i: (i, 0)),
                  pl.BlockSpec((1, C), lambda i: (0, 0)),
                  pl.BlockSpec((1, C), lambda i: (0, 0))],
        out_specs=pl.BlockSpec((tm, C), lambda i: (i, 0)),
        compiler_params=pltpu.CompilerParams(dimension_semantics=("parallel",)),
    )(x2d, gamma.reshape(1, C), beta.reshape(1, C))


# ----------------------------------------------------------------------------
# Kernel B: fused QKV projection + windowed attention (+ earth position bias)
#           + single K=C output projection
# ----------------------------------------------------------------------------
def _window_attn_kernel(x_ref, qkvw_ref, qkvb_ref, bias_ref, pw_ref, pb_ref,
                        o_ref, oacc_ref, *, num_heads):
    # x_ref:    (1, wt, N, C) bf16 normalized tokens (padded tokens are exact 0,
    #           so Linear(0) = qkv_bias, matching the reference which pads before QKV).
    # qkvw_ref: (C, 3C) bf16, q-columns pre-scaled by head_dim**-0.5.
    # qkvb_ref: (1, 3C) f32, q-part pre-scaled.
    # bias_ref: (H, wt, N, N) bf16 earth-position bias (VMEM-resident across batch axis).
    # pw_ref:   (C, C) bf16 output projection, pb_ref: (1, C) f32.
    # oacc_ref: (wt*N, C) f32 scratch — head outputs land here column-wise so the
    #           output projection is one full-depth (K=C) MXU pass.
    _, wt, N, C = x_ref.shape
    hd = C // num_heads

    x = x_ref[0].reshape(wt * N, C)                                   # bf16
    qkv = jnp.dot(x, qkvw_ref[...], preferred_element_type=F32)       # (wt*N, 3C) f32
    qkv = (qkv + qkvb_ref[...]).astype(BF16).reshape(wt, N, 3 * C)    # bf16, no f32 block kept

    for h in range(num_heads):
        q = qkv[:, :, h * hd:(h + 1) * hd]                            # pre-scaled q
        k = qkv[:, :, C + h * hd:C + (h + 1) * hd]
        v = qkv[:, :, 2 * C + h * hd:2 * C + (h + 1) * hd]
        s = jnp.einsum("wnd,wmd->wnm", q, k, preferred_element_type=F32)
        s = s + bias_ref[h].astype(F32)                               # (wt, N, N)
        s = s - jnp.max(s, axis=-1, keepdims=True)
        p = jnp.exp(s)
        p = p / jnp.sum(p, axis=-1, keepdims=True)                    # exact softmax
        o_h = jnp.einsum("wnm,wmd->wnd", p.astype(BF16), v,
                         preferred_element_type=F32)                  # (wt, N, hd) f32
        oacc_ref[:, h * hd:(h + 1) * hd] = o_h.reshape(wt * N, hd)

    y = jnp.dot(oacc_ref[...].astype(BF16), pw_ref[...],
                preferred_element_type=F32) + pb_ref[...]             # (wt*N, C) f32
    o_ref[0] = y.reshape(wt, N, C).astype(o_ref.dtype)


def window_attention(x_win, qkv_w, qkv_b, pos_bias, proj_w, proj_b, num_heads,
                     *, out_dtype=BF16):
    B_, nW, N, C = x_win.shape
    H = num_heads
    cap = _vmem_capacity_bytes()
    # Generation-aware budget: ~16 MiB on v7x (64 MiB VMEM), ~32 MiB on v5e/v6e.
    wt, est = _pick_window_tile(nW, N, C, H, cap // 4)
    vmem_limit = int(min(cap, max(2 * est, 24 * 1024 * 1024)))
    grid = (nW // wt, B_)    # batch-window axis innermost -> bias block stays resident
    return pl.pallas_call(
        functools.partial(_window_attn_kernel, num_heads=H),
        out_shape=jax.ShapeDtypeStruct((B_, nW, N, C), out_dtype),
        grid=grid,
        in_specs=[
            pl.BlockSpec((1, wt, N, C), lambda w, b: (b, w, 0, 0)),
            pl.BlockSpec((C, 3 * C), lambda w, b: (0, 0)),
            pl.BlockSpec((1, 3 * C), lambda w, b: (0, 0)),
            pl.BlockSpec((H, wt, N, N), lambda w, b: (0, w, 0, 0)),
            pl.BlockSpec((C, C), lambda w, b: (0, 0)),
            pl.BlockSpec((1, C), lambda w, b: (0, 0)),
        ],
        out_specs=pl.BlockSpec((1, wt, N, C), lambda w, b: (b, w, 0, 0)),
        scratch_shapes=[pltpu.VMEM((wt * N, C), F32)],
        compiler_params=pltpu.CompilerParams(
            dimension_semantics=("parallel", "parallel"),
            vmem_limit_bytes=vmem_limit),
    )(x_win, qkv_w, qkv_b.reshape(1, 3 * C), pos_bias, proj_w, proj_b.reshape(1, C))


# ----------------------------------------------------------------------------
# Kernel C: fused residual + LayerNorm2 + MLP (fc1 -> GELU -> fc2) + residual
# ----------------------------------------------------------------------------
def _residual_mlp_kernel(x_ref, a_ref, g_ref, b_ref, w1_ref, b1_ref, w2_ref,
                         b2_ref, o_ref, *, eps):
    x = x_ref[...].astype(F32) + a_ref[...].astype(F32)          # x = shortcut + attn
    xn = _layernorm(x, g_ref[...], b_ref[...], eps)
    h = jnp.dot(xn.astype(BF16), w1_ref[...],
                preferred_element_type=F32) + b1_ref[...]
    h = _gelu(h)                                                 # hidden stays in VMEM
    y = jnp.dot(h.astype(BF16), w2_ref[...],
                preferred_element_type=F32) + b2_ref[...]
    o_ref[...] = (x + y).astype(o_ref.dtype)                     # x + mlp(norm2(x))


def residual_mlp(shortcut2d, attn2d, gamma, beta, w1, b1, w2, b2, *, eps=1e-5):
    M, C = shortcut2d.shape
    Hd = w1.shape[1]
    tm = _row_tile(M)
    return pl.pallas_call(
        functools.partial(_residual_mlp_kernel, eps=eps),
        out_shape=jax.ShapeDtypeStruct((M, C), shortcut2d.dtype),
        grid=(pl.cdiv(M, tm),),
        in_specs=[pl.BlockSpec((tm, C), lambda i: (i, 0)),
                  pl.BlockSpec((tm, C), lambda i: (i, 0)),
                  pl.BlockSpec((1, C), lambda i: (0, 0)),
                  pl.BlockSpec((1, C), lambda i: (0, 0)),
                  pl.BlockSpec((C, Hd), lambda i: (0, 0)),
                  pl.BlockSpec((1, Hd), lambda i: (0, 0)),
                  pl.BlockSpec((Hd, C), lambda i: (0, 0)),
                  pl.BlockSpec((1, C), lambda i: (0, 0))],
        out_specs=pl.BlockSpec((tm, C), lambda i: (i, 0)),
        compiler_params=pltpu.CompilerParams(dimension_semantics=("parallel",)),
    )(shortcut2d, attn2d, gamma.reshape(1, C), beta.reshape(1, C),
      w1, b1.reshape(1, Hd), w2, b2.reshape(1, C))


# ----------------------------------------------------------------------------
# One-time parameter preparation (hoisted out of the per-call path)
# ----------------------------------------------------------------------------
def build_position_bias(bias_table, pos_index, window_size, num_heads):
    N = window_size[0] * window_size[1] * window_size[2]
    nW = bias_table.shape[1]
    b = bias_table[pos_index.reshape(-1)]            # (N*N, nW, H)
    b = b.reshape(N, N, nW, num_heads)
    return jnp.transpose(b, (3, 2, 0, 1))            # (H, nW, N, N)


def prepare_block_params(raw, cfg):
    """Fold the qk scale into q-columns, pre-cast streamed constants to bf16,
    and pre-build the earth-position bias tensor (pure functions of frozen params)."""
    C = raw["qkv_w"].shape[0]
    scale = cfg["scale"]
    qkv_w = raw["qkv_w"].astype(F32)
    qkv_b = raw["qkv_b"].astype(F32)
    qkv_w = qkv_w.at[:, :C].multiply(scale)          # (xWq + bq)*s == x(Wq*s) + (bq*s)
    qkv_b = qkv_b.at[:C].multiply(scale)
    bias = build_position_bias(raw["bias_table"], cfg["pos_index"],
                               cfg["window_size"], cfg["num_heads"])
    return {
        "g1": raw["g1"].astype(F32), "b1": raw["b1"].astype(F32),
        "qkv_w": qkv_w.astype(BF16), "qkv_b": qkv_b,
        "proj_w": raw["proj_w"].astype(BF16), "proj_b": raw["proj_b"].astype(F32),
        "pos_bias": bias.astype(BF16),
        "g2": raw["g2"].astype(F32), "b2": raw["b2"].astype(F32),
        "fc1_w": raw["fc1_w"].astype(BF16), "fc1_b": raw["fc1_b"].astype(F32),
        "fc2_w": raw["fc2_w"].astype(BF16), "fc2_b": raw["fc2_b"].astype(F32),
    }


# ----------------------------------------------------------------------------
# Module forward (glue around the Pallas kernels)
# ----------------------------------------------------------------------------
def earth_specific_block(x, p, cfg, roll):
    Pl, Lat, Lon = cfg["input_resolution"]
    wpl, wlat, wlon = cfg["window_size"]
    spl, slat, slon = cfg["shift_size"]
    B, L, C = x.shape
    assert L == Pl * Lat * Lon, "input feature has wrong size"
    M = B * L

    shortcut = x

    # Kernel A: LayerNorm1.  Its C-wide bf16 output is what gets padded / rolled /
    # windowed (padded zero-tokens become exactly qkv_bias inside kernel B).
    xn = layer_norm(x.reshape(M, C), p["g1"], p["b1"])               # (M, C) bf16
    xn = xn.reshape(B, Pl, Lat, Lon, C)

    left, right, top, bottom, front, back = cfg["pad"]
    xn = jnp.pad(xn, ((0, 0), (front, back), (top, bottom), (left, right), (0, 0)))
    _, Pl_p, Lat_p, Lon_p, _ = xn.shape

    if roll:
        xn = jnp.roll(xn, shift=(-spl, -slat, -slon), axis=(1, 2, 3))

    # TODO(synk): the window_partition / window_reverse transposes are left to XLA;
    # they could be folded into kernel B via PrefetchScalarGridSpec index gathers.
    xw = window_partition(xn, cfg["window_size"])
    B_, nW = xw.shape[0], xw.shape[1]
    N = wpl * wlat * wlon
    xw = xw.reshape(B_, nW, N, C)

    # Kernel B: fused QKV + windowed attention + output projection.
    attn = window_attention(xw, p["qkv_w"], p["qkv_b"], p["pos_bias"],
                            p["proj_w"], p["proj_b"], cfg["num_heads"])
    attn = attn.reshape(B_, nW, wpl, wlat, wlon, C)

    xr = window_reverse(attn, cfg["window_size"], Pl_p, Lat_p, Lon_p)
    if roll:
        xr = jnp.roll(xr, shift=(spl, slat, slon), axis=(1, 2, 3))
    xr = xr[:, front:Pl_p - back, top:Lat_p - bottom, left:Lon_p - right, :]
    attn_flat = xr.reshape(M, C)

    # Kernel C: residual + LayerNorm2 + MLP + residual (drop_path = Identity, dt = 1).
    out = residual_mlp(shortcut.reshape(M, C), attn_flat,
                       p["g2"], p["b2"], p["fc1_w"], p["fc1_b"],
                       p["fc2_w"], p["fc2_b"])
    return out.reshape(B, L, C)


def basic_layer(x, block_params, cfg):
    for i, p in enumerate(block_params):
        x = earth_specific_block(x, p, cfg, roll=(i % 2 > 0))
    return x


# ----------------------------------------------------------------------------
# Parameter init (deterministic, synthetic)
# ----------------------------------------------------------------------------
def init_block_params(key, dim, hidden, table_rows, n_win_types, num_heads):
    ks = jax.random.split(key, 8)

    def n(k, shape, s=0.02):
        return (s * jax.random.normal(k, shape)).astype(F32)

    return {
        "g1": jnp.ones((dim,), F32), "b1": jnp.zeros((dim,), F32),
        "qkv_w": n(ks[0], (dim, 3 * dim)), "qkv_b": n(ks[1], (3 * dim,)),
        "proj_w": n(ks[2], (dim, dim)), "proj_b": n(ks[3], (dim,)),
        "bias_table": n(ks[4], (table_rows, n_win_types, num_heads)),
        "g2": jnp.ones((dim,), F32), "b2": jnp.zeros((dim,), F32),
        "fc1_w": n(ks[5], (dim, hidden)), "fc1_b": n(ks[6], (hidden,)),
        "fc2_w": n(ks[7], (hidden, dim)), "fc2_b": jnp.zeros((dim,), F32),
    }


# ----------------------------------------------------------------------------
if __name__ == "__main__":
    # BasicLayer config (small, but exercises padding, windows, roll, MLP)
    dim = 32
    num_heads = 4
    depth = 2
    mlp_ratio = 4.0
    input_resolution = (2, 4, 10)     # (Pl, Lat, Lon)
    window_size = (2, 2, 4)
    shift_size = (1, 3, 5)            # EarthSpecificBlock default
    B = 2

    pads = get_pad3d(input_resolution, window_size)
    pad_res = (input_resolution[0] + pads[4] + pads[5],
               input_resolution[1] + pads[2] + pads[3],
               input_resolution[2] + pads[0] + pads[1])
    type_of_windows = (pad_res[0] // window_size[0]) * (pad_res[1] // window_size[1])
    table_rows = window_size[0] ** 2 * window_size[1] ** 2 * (window_size[2] * 2 - 1)
    pos_index = get_earth_position_index(window_size)   # numpy (N, N) int32
    head_dim = dim // num_heads
    hidden = int(dim * mlp_ratio)

    cfg = {
        "input_resolution": input_resolution,
        "window_size": window_size,
        "shift_size": shift_size,
        "num_heads": num_heads,
        "scale": head_dim ** (-0.5),
        "pad": pads,
        "pos_index": pos_index,
    }

    key = jax.random.PRNGKey(0)
    key, xkey = jax.random.split(key)
    L = int(np.prod(input_resolution))
    x = jax.random.normal(xkey, (B, L, dim), dtype=F32)

    block_params = []
    for _ in range(depth):
        key, sub = jax.random.split(key)
        raw = init_block_params(sub, dim, hidden, table_rows, type_of_windows, num_heads)
        block_params.append(prepare_block_params(raw, cfg))   # one-time prep (bf16 + bias)

    run = jax.jit(lambda xx, params: basic_layer(xx, params, cfg))
    out = run(x, block_params)
    out = jax.block_until_ready(out)

    assert out.shape == (B, L, dim), out.shape
    assert out.dtype == F32
    assert bool(jnp.all(jnp.isfinite(out)))
    print("KERNEL_OK")
</pallas_src>

<mosaic_0001>
module attributes {stable_mosaic.version = 11 : i64} {
  func.func @_ln_kernel(%arg0: i32, %arg1: memref<80x32xf32, #tpu.memory_space<vmem>>, %arg2: memref<1x32xf32, #tpu.memory_space<vmem>>, %arg3: memref<1x32xf32, #tpu.memory_space<vmem>>, %arg4: memref<80x32xbf16, #tpu.memory_space<vmem>>) attributes {dimension_semantics = [#tpu.dimension_semantics<parallel>], iteration_bounds = array<i64: 2>, scalar_prefetch = 0 : i64, scratch_operands = 0 : i64, tpu.core_type = #tpu.core_type<tc>, window_params = [{transform_indices = @transform_0, window_bounds = array<i64: 80, 32>}, {pipeline_mode = #tpu.pipeline_mode<synchronous>, transform_indices = @transform_1, window_bounds = array<i64: 1, 32>}, {pipeline_mode = #tpu.pipeline_mode<synchronous>, transform_indices = @transform_2, window_bounds = array<i64: 1, 32>}, {transform_indices = @transform_3, window_bounds = array<i64: 80, 32>}]} {
    %c0 = arith.constant 0 : index
    %c0_0 = arith.constant 0 : index
    %0 = vector.load %arg1[%c0, %c0_0] : memref<80x32xf32, #tpu.memory_space<vmem>>, vector<80x32xf32>
    %c0_1 = arith.constant 0 : index
    %c0_2 = arith.constant 0 : index
    %1 = vector.load %arg2[%c0_1, %c0_2] : memref<1x32xf32, #tpu.memory_space<vmem>>, vector<1x32xf32>
    %c0_3 = arith.constant 0 : index
    %c0_4 = arith.constant 0 : index
    %2 = vector.load %arg3[%c0_3, %c0_4] : memref<1x32xf32, #tpu.memory_space<vmem>>, vector<1x32xf32>
    %cst = arith.constant dense<0.000000e+00> : vector<80xf32>
    %3 = vector.multi_reduction <add>, %0, %cst [1] : vector<80x32xf32> to vector<80xf32>
    %4 = vector.shape_cast %3 : vector<80xf32> to vector<80x1xf32>
    %cst_5 = arith.constant 3.200000e+01 : f32
    %5 = vector.broadcast %cst_5 : f32 to vector<80x1xf32>
    %6 = arith.divf %4, %5 : vector<80x1xf32>
    %7 = vector.broadcast %6 : vector<80x1xf32> to vector<80x32xf32>
    %8 = arith.subf %0, %7 : vector<80x32xf32>
    %9 = arith.mulf %8, %8 : vector<80x32xf32>
    %cst_6 = arith.constant dense<0.000000e+00> : vector<80xf32>
    %10 = vector.multi_reduction <add>, %9, %cst_6 [1] : vector<80x32xf32> to vector<80xf32>
    %11 = vector.shape_cast %10 : vector<80xf32> to vector<80x1xf32>
    %cst_7 = arith.constant 3.200000e+01 : f32
    %12 = vector.broadcast %cst_7 : f32 to vector<80x1xf32>
    %13 = arith.divf %11, %12 : vector<80x1xf32>
    %cst_8 = arith.constant 9.99999974E-6 : f32
    %14 = vector.broadcast %cst_8 : f32 to vector<80x1xf32>
    %15 = arith.addf %13, %14 : vector<80x1xf32>
    %16 = math.rsqrt %15 : vector<80x1xf32>
    %17 = vector.broadcast %16 : vector<80x1xf32> to vector<80x32xf32>
    %18 = arith.mulf %8, %17 : vector<80x32xf32>
    %19 = vector.broadcast %1 : vector<1x32xf32> to vector<80x32xf32>
    %20 = arith.mulf %18, %19 : vector<80x32xf32>
    %21 = vector.broadcast %2 : vector<1x32xf32> to vector<80x32xf32>
    %22 = arith.addf %20, %21 : vector<80x32xf32>
    %23 = arith.truncf %22 : vector<80x32xf32> to vector<80x32xbf16>
    %c0_9 = arith.constant 0 : index
    %c0_10 = arith.constant 0 : index
    %24 = vector.load %arg4[%c0_9, %c0_10] : memref<80x32xbf16, #tpu.memory_space<vmem>>, vector<80x32xbf16>
    tpu.vector_store %arg4[%c0_9, %c0_10], %23 {strides = array<i32>} : memref<80x32xbf16, #tpu.memory_space<vmem>>, vector<80x32xbf16>,
    return
  }
  func.func @transform_0(%arg0: i32) -> (i32, i32) {
    %c0_i32 = arith.constant 0 : i32
    %c0_i32_0 = arith.constant 0 : i32
    return %arg0, %c0_i32 : i32, i32
  }
  func.func @transform_1(%arg0: i32) -> (i32, i32) {
    %c0_i32 = arith.constant 0 : i32
    %c0_i32_0 = arith.constant 0 : i32
    %c0_i32_1 = arith.constant 0 : i32
    return %c0_i32, %c0_i32_0 : i32, i32
  }
  func.func @transform_2(%arg0: i32) -> (i32, i32) {
    %c0_i32 = arith.constant 0 : i32
    %c0_i32_0 = arith.constant 0 : i32
    %c0_i32_1 = arith.constant 0 : i32
    return %c0_i32, %c0_i32_0 : i32, i32
  }
  func.func @transform_3(%arg0: i32) -> (i32, i32) {
    %c0_i32 = arith.constant 0 : i32
    %c0_i32_0 = arith.constant 0 : i32
    return %arg0, %c0_i32 : i32, i32
  }
}

module attributes {stable_mosaic.version = 11 : i64} {
  func.func @_window_attn_kernel(%arg0: i32, %arg1: i32, %arg2: memref<1x2x16x32xbf16, #tpu.memory_space<vmem>>, %arg3: memref<32x96xbf16, #tpu.memory_space<vmem>>, %arg4: memref<1x96xf32, #tpu.memory_space<vmem>>, %arg5: memref<4x2x16x16xbf16, #tpu.memory_space<vmem>>, %arg6: memref<32x32xbf16, #tpu.memory_space<vmem>>, %arg7: memref<1x32xf32, #tpu.memory_space<vmem>>, %arg8: memref<1x2x16x32xbf16, #tpu.memory_space<vmem>>, %arg9: memref<32x32xf32, #tpu.memory_space<vmem>>) attributes {dimension_semantics = [#tpu.dimension_semantics<parallel>, #tpu.dimension_semantics<parallel>], iteration_bounds = array<i64: 1, 6>, scalar_prefetch = 0 : i64, scratch_operands = 1 : i64, tpu.core_type = #tpu.core_type<tc>, window_params = [{transform_indices = @transform_0, window_bounds = array<i64: 1, 2, 16, 32>}, {pipeline_mode = #tpu.pipeline_mode<synchronous>, transform_indices = @transform_1, window_bounds = array<i64: 32, 96>}, {pipeline_mode = #tpu.pipeline_mode<synchronous>, transform_indices = @transform_2, window_bounds = array<i64: 1, 96>}, {transform_indices = @transform_3, window_bounds = array<i64: 4, 2, 16, 16>}, {pipeline_mode = #tpu.pipeline_mode<synchronous>, transform_indices = @transform_4, window_bounds = array<i64: 32, 32>}, {pipeline_mode = #tpu.pipeline_mode<synchronous>, transform_indices = @transform_5, window_bounds = array<i64: 1, 32>}, {transform_indices = @transform_6, window_bounds = array<i64: 1, 2, 16, 32>}]} {
    %c0 = arith.constant 0 : index
    %c0_0 = arith.constant 0 : index
    %c0_1 = arith.constant 0 : index
    %c0_2 = arith.constant 0 : index
    %0 = vector.load %arg2[%c0, %c0_0, %c0_1, %c0_2] : memref<1x2x16x32xbf16, #tpu.memory_space<vmem>>, vector<1x2x16x32xbf16>
    %1 = vector.shape_cast %0 : vector<1x2x16x32xbf16> to vector<2x16x32xbf16>
    %2 = vector.shape_cast %1 : vector<2x16x32xbf16> to vector<32x32xbf16>
    %c0_3 = arith.constant 0 : index
    %c0_4 = arith.constant 0 : index
    %3 = vector.load %arg3[%c0_3, %c0_4] : memref<32x96xbf16, #tpu.memory_space<vmem>>, vector<32x96xbf16>
    %cst = arith.constant dense<0.000000e+00> : vector<32x96xf32>
    %4 = tpu.matmul %2, %3, %cst {dimension_numbers = #tpu.dot_dimension_numbers<[1], [0], [0], [1], [0, 0, 1, 1], [], []>} : vector<32x32xbf16>, vector<32x96xbf16>, vector<32x96xf32> -> vector<32x96xf32>
    %c0_5 = arith.constant 0 : index
    %c0_6 = arith.constant 0 : index
    %5 = vector.load %arg4[%c0_5, %c0_6] : memref<1x96xf32, #tpu.memory_space<vmem>>, vector<1x96xf32>
    %6 = vector.broadcast %5 : vector<1x96xf32> to vector<32x96xf32>
    %7 = arith.addf %4, %6 : vector<32x96xf32>
    %8 = arith.truncf %7 : vector<32x96xf32> to vector<32x96xbf16>
    %9 = vector.shape_cast %8 : vector<32x96xbf16> to vector<2x16x96xbf16>
    %10 = vector.extract_strided_slice %9 {offsets = [0, 0, 0], sizes = [2, 16, 8], strides = [1, 1, 1]} : vector<2x16x96xbf16> to vector<2x16x8xbf16>
    %11 = vector.extract_strided_slice %9 {offsets = [0, 0, 32], sizes = [2, 16, 8], strides = [1, 1, 1]} : vector<2x16x96xbf16> to vector<2x16x8xbf16>
    %12 = vector.extract_strided_slice %9 {offsets = [0, 0, 64], sizes = [2, 16, 8], strides = [1, 1, 1]} : vector<2x16x96xbf16> to vector<2x16x8xbf16>
    "tpu.trace_start"() <{level = 10 : i32, message = "wnd,wmd->wnm"}> : () -> ()
    %cst_7 = arith.constant dense<0.000000e+00> : vector<2x16x16xf32>
    %13 = tpu.matmul %10, %11, %cst_7 {dimension_numbers = #tpu.dot_dimension_numbers<[2], [2], [1], [1], [0, 0, 0, 1, 1, 1], [0], [0]>} : vector<2x16x8xbf16>, vector<2x16x8xbf16>, vector<2x16x16xf32> -> vector<2x16x16xf32>
    "tpu.trace_stop"() : () -> ()
    %c0_8 = arith.constant 0 : index
    %c0_9 = arith.constant 0 : index
    %c0_10 = arith.constant 0 : index
    %c0_11 = arith.constant 0 : index
    %14 = vector.load %arg5[%c0_8, %c0_9, %c0_10, %c0_11] : memref<4x2x16x16xbf16, #tpu.memory_space<vmem>>, vector<1x2x16x16xbf16>
    %15 = vector.shape_cast %14 : vector<1x2x16x16xbf16> to vector<2x16x16xbf16>
    %16 = arith.extf %15 : vector<2x16x16xbf16> to vector<2x16x16xf32>
    %17 = arith.addf %13, %16 : vector<2x16x16xf32>
    %cst_12 = arith.constant dense<0xFF800000> : vector<2x16xf32>
    %18 = vector.multi_reduction <maximumf>, %17, %cst_12 [2] : vector<2x16x16xf32> to vector<2x16xf32>
    %19 = vector.shape_cast %18 : vector<2x16xf32> to vector<2x16x1xf32>
    %20 = vector.broadcast %19 : vector<2x16x1xf32> to vector<2x16x16xf32>
    %21 = arith.subf %17, %20 : vector<2x16x16xf32>
    %22 = math.exp %21 : vector<2x16x16xf32>
    %cst_13 = arith.constant dense<0.000000e+00> : vector<2x16xf32>
    %23 = vector.multi_reduction <add>, %22, %cst_13 [2] : vector<2x16x16xf32> to vector<2x16xf32>
    %24 = vector.shape_cast %23 : vector<2x16xf32> to vector<2x16x1xf32>
    %25 = vector.broadcast %24 : vector<2x16x1xf32> to vector<2x16x16xf32>
    %26 = arith.divf %22, %25 : vector<2x16x16xf32>
    %27 = arith.truncf %26 : vector<2x16x16xf32> to vector<2x16x16xbf16>
    "tpu.trace_start"() <{level = 10 : i32, message = "wnm,wmd->wnd"}> : () -> ()
    %cst_14 = arith.constant dense<0.000000e+00> : vector<2x16x8xf32>
    %28 = tpu.matmul %27, %12, %cst_14 {dimension_numbers = #tpu.dot_dimension_numbers<[2], [1], [1], [2], [0, 0, 0, 1, 1, 2], [0], [0]>} : vector<2x16x16xbf16>, vector<2x16x8xbf16>, vector<2x16x8xf32> -> vector<2x16x8xf32>
    "tpu.trace_stop"() : () -> ()
    %29 = vector.shape_cast %28 : vector<2x16x8xf32> to vector<32x8xf32>
    %c0_15 = arith.constant 0 : index
    %c0_16 = arith.constant 0 : index
    %30 = vector.load %arg9[%c0_15, %c0_16] : memref<32x32xf32, #tpu.memory_space<vmem>>, vector<32x8xf32>
    tpu.vector_store %arg9[%c0_15, %c0_16], %29 {strides = array<i32>} : memref<32x32xf32, #tpu.memory_space<vmem>>, vector<32x8xf32>,
    %31 = vector.extract_strided_slice %9 {offsets = [0, 0, 8], sizes = [2, 16, 8], strides = [1, 1, 1]} : vector<2x16x96xbf16> to vector<2x16x8xbf16>
    %32 = vector.extract_strided_slice %9 {offsets = [0, 0, 40], sizes = [2, 16, 8], strides = [1, 1, 1]} : vector<2x16x96xbf16> to vector<2x16x8xbf16>
    %33 = vector.extract_strided_slice %9 {offsets = [0, 0, 72], sizes = [2, 16, 8], strides = [1, 1, 1]} : vector<2x16x96xbf16> to vector<2x16x8xbf16>
    "tpu.trace_start"() <{level = 10 : i32, message = "wnd,wmd->wnm"}> : () -> ()
    %cst_17 = arith.constant dense<0.000000e+00> : vector<2x16x16xf32>
    %34 = tpu.matmul %31, %32, %cst_17 {dimension_numbers = #tpu.dot_dimension_numbers<[2], [2], [1], [1], [0, 0, 0, 1, 1, 1], [0], [0]>} : vector<2x16x8xbf16>, vector<2x16x8xbf16>, vector<2x16x16xf32> -> vector<2x16x16xf32>
    "tpu.trace_stop"() : () -> ()
    %c1 = arith.constant 1 : index
    %c0_18 = arith.constant 0 : index
    %c0_19 = arith.constant 0 : index
    %c0_20 = arith.constant 0 : index
    %35 = vector.load %arg5[%c1, %c0_18, %c0_19, %c0_20] : memref<4x2x16x16xbf16, #tpu.memory_space<vmem>>, vector<1x2x16x16xbf16>
    %36 = vector.shape_cast %35 : vector<1x2x16x16xbf16> to vector<2x16x16xbf16>
    %37 = arith.extf %36 : vector<2x16x16xbf16> to vector<2x16x16xf32>
    %38 = arith.addf %34, %37 : vector<2x16x16xf32>
    %cst_21 = arith.constant dense<0xFF800000> : vector<2x16xf32>
    %39 = vector.multi_reduction <maximumf>, %38, %cst_21 [2] : vector<2x16x16xf32> to vector<2x16xf32>
    %40 = vector.shape_cast %39 : vector<2x16xf32> to vector<2x16x1xf32>
    %41 = vector.broadcast %40 : vector<2x16x1xf32> to vector<2x16x16xf32>
    %42 = arith.subf %38, %41 : vector<2x16x16xf32>
    %43 = math.exp %42 : vector<2x16x16xf32>
    %cst_22 = arith.constant dense<0.000000e+00> : vector<2x16xf32>
    %44 = vector.multi_reduction <add>, %43, %cst_22 [2] : vector<2x16x16xf32> to vector<2x16xf32>
    %45 = vector.shape_cast %44 : vector<2x16xf32> to vector<2x16x1xf32>
    %46 = vector.broadcast %45 : vector<2x16x1xf32> to vector<2x16x16xf32>
    %47 = arith.divf %43, %46 : vector<2x16x16xf32>
    %48 = arith.truncf %47 : vector<2x16x16xf32> to vector<2x16x16xbf16>
    "tpu.trace_start"() <{level = 10 : i32, message = "wnm,wmd->wnd"}> : () -> ()
    %cst_23 = arith.constant dense<0.000000e+00> : vector<2x16x8xf32>
    %49 = tpu.matmul %48, %33, %cst_23 {dimension_numbers = #tpu.dot_dimension_numbers<[2], [1], [1], [2], [0, 0, 0, 1, 1, 2], [0], [0]>} : vector<2x16x16xbf16>, vector<2x16x8xbf16>, vector<2x16x8xf32> -> vector<2x16x8xf32>
    "tpu.trace_stop"() : () -> ()
    %50 = vector.shape_cast %49 : vector<2x16x8xf32> to vector<32x8xf32>
    %c0_24 = arith.constant 0 : index
    %c8 = arith.constant 8 : index
    %51 = vector.load %arg9[%c0_24, %c8] : memref<32x32xf32, #tpu.memory_space<vmem>>, vector<32x8xf32>
    tpu.vector_store %arg9[%c0_24, %c8], %50 {strides = array<i32>} : memref<32x32xf32, #tpu.memory_space<vmem>>, vector<32x8xf32>,
    %52 = vector.extract_strided_slice %9 {offsets = [0, 0, 16], sizes = [2, 16, 8], strides = [1, 1, 1]} : vector<2x16x96xbf16> to vector<2x16x8xbf16>
    %53 = vector.extract_strided_slice %9 {offsets = [0, 0, 48], sizes = [2, 16, 8], strides = [1, 1, 1]} : vector<2x16x96xbf16> to vector<2x16x8xbf16>
    %54 = vector.extract_strided_slice %9 {offsets = [0, 0, 80], sizes = [2, 16, 8], strides = [1, 1, 1]} : vector<2x16x96xbf16> to vector<2x16x8xbf16>
    "tpu.trace_start"() <{level = 10 : i32, message = "wnd,wmd->wnm"}> : () -> ()
    %cst_25 = arith.constant dense<0.000000e+00> : vector<2x16x16xf32>
    %55 = tpu.matmul %52, %53, %cst_25 {dimension_numbers = #tpu.dot_dimension_numbers<[2], [2], [1], [1], [0, 0, 0, 1, 1, 1], [0], [0]>} : vector<2x16x8xbf16>, vector<2x16x8xbf16>, vector<2x16x16xf32> -> vector<2x16x16xf32>
    "tpu.trace_stop"() : () -> ()
    %c2 = arith.constant 2 : index
    %c0_26 = arith.constant 0 : index
    %c0_27 = arith.constant 0 : index
    %c0_28 = arith.constant 0 : index
    %56 = vector.load %arg5[%c2, %c0_26, %c0_27, %c0_28] : memref<4x2x16x16xbf16, #tpu.memory_space<vmem>>, vector<1x2x16x16xbf16>
    %57 = vector.shape_cast %56 : vector<1x2x16x16xbf16> to vector<2x16x16xbf16>
    %58 = arith.extf %57 : vector<2x16x16xbf16> to vector<2x16x16xf32>
    %59 = arith.addf %55, %58 : vector<2x16x16xf32>
    %cst_29 = arith.constant dense<0xFF800000> : vector<2x16xf32>
    %60 = vector.multi_reduction <maximumf>, %59, %cst_29 [2] : vector<2x16x16xf32> to vector<2x16xf32>
    %61 = vector.shape_cast %60 : vector<2x16xf32> to vector<2x16x1xf32>
    %62 = vector.broadcast %61 : vector<2x16x1xf32> to vector<2x16x16xf32>
    %63 = arith.subf %59, %62 : vector<2x16x16xf32>
    %64 = math.exp %63 : vector<2x16x16xf32>
    %cst_30 = arith.constant dense<0.000000e+00> : vector<2x16xf32>
    %65 = vector.multi_reduction <add>, %64, %cst_30 [2] : vector<2x16x16xf32> to vector<2x16xf32>
    %66 = vector.shape_cast %65 : vector<2x16xf32> to vector<2x16x1xf32>
    %67 = vector.broadcast %66 : vector<2x16x1xf32> to vector<2x16x16xf32>
    %68 = arith.divf %64, %67 : vector<2x16x16xf32>
    %69 = arith.truncf %68 : vector<2x16x16xf32> to vector<2x16x16xbf16>
    "tpu.trace_start"() <{level = 10 : i32, message = "wnm,wmd->wnd"}> : () -> ()
    %cst_31 = arith.constant dense<0.000000e+00> : vector<2x16x8xf32>
    %70 = tpu.matmul %69, %54, %cst_31 {dimension_numbers = #tpu.dot_dimension_numbers<[2], [1], [1], [2], [0, 0, 0, 1, 1, 2], [0], [0]>} : vector<2x16x16xbf16>, vector<2x16x8xbf16>, vector<2x16x8xf32> -> vector<2x16x8xf32>
    "tpu.trace_stop"() : () -> ()
    %71 = vector.shape_cast %70 : vector<2x16x8xf32> to vector<32x8xf32>
    %c0_32 = arith.constant 0 : index
    %c16 = arith.constant 16 : index
    %72 = vector.load %arg9[%c0_32, %c16] : memref<32x32xf32, #tpu.memory_space<vmem>>, vector<32x8xf32>
    tpu.vector_store %arg9[%c0_32, %c16], %71 {strides = array<i32>} : memref<32x32xf32, #tpu.memory_space<vmem>>, vector<32x8xf32>,
    %73 = vector.extract_strided_slice %9 {offsets = [0, 0, 24], sizes = [2, 16, 8], strides = [1, 1, 1]} : vector<2x16x96xbf16> to vector<2x16x8xbf16>
    %74 = vector.extract_strided_slice %9 {offsets = [0, 0, 56], sizes = [2, 16, 8], strides = [1, 1, 1]} : vector<2x16x96xbf16> to vector<2x16x8xbf16>
    %75 = vector.extract_strided_slice %9 {offsets = [0, 0, 88], sizes = [2, 16, 8], strides = [1, 1, 1]} : vector<2x16x96xbf16> to vector<2x16x8xbf16>
    "tpu.trace_start"() <{level = 10 : i32, message = "wnd,wmd->wnm"}> : () -> ()
    %cst_33 = arith.constant dense<0.000000e+00> : vector<2x16x16xf32>
    %76 = tpu.matmul %73, %74, %cst_33 {dimension_numbers = #tpu.dot_dimension_numbers<[2], [2], [1], [1], [0, 0, 0, 1, 1, 1], [0], [0]>} : vector<2x16x8xbf16>, vector<2x16x8xbf16>, vector<2x16x16xf32> -> vector<2x16x16xf32>
    "tpu.trace_stop"() : () -> ()
    %c3 = arith.constant 3 : index
    %c0_34 = arith.constant 0 : index
    %c0_35 = arith.constant 0 : index
    %c0_36 = arith.constant 0 : index
    %77 = vector.load %arg5[%c3, %c0_34, %c0_35, %c0_36] : memref<4x2x16x16xbf16, #tpu.memory_space<vmem>>, vector<1x2x16x16xbf16>
    %78 = vector.shape_cast %77 : vector<1x2x16x16xbf16> to vector<2x16x16xbf16>
    %79 = arith.extf %78 : vector<2x16x16xbf16> to vector<2x16x16xf32>
    %80 = arith.addf %76, %79 : vector<2x16x16xf32>
    %cst_37 = arith.constant dense<0xFF800000> : vector<2x16xf32>
    %81 = vector.multi_reduction <maximumf>, %80, %cst_37 [2] : vector<2x16x16xf32> to vector<2x16xf32>
    %82 = vector.shape_cast %81 : vector<2x16xf32> to vector<2x16x1xf32>
    %83 = vector.broadcast %82 : vector<2x16x1xf32> to vector<2x16x16xf32>
    %84 = arith.subf %80, %83 : vector<2x16x16xf32>
    %85 = math.exp %84 : vector<2x16x16xf32>
    %cst_38 = arith.constant dense<0.000000e+00> : vector<2x16xf32>
    %86 = vector.multi_reduction <add>, %85, %cst_38 [2] : vector<2x16x16xf32> to vector<2x16xf32>
    %87 = vector.shape_cast %86 : vector<2x16xf32> to vector<2x16x1xf32>
    %88 = vector.broadcast %87 : vector<2x16x1xf32> to vector<2x16x16xf32>
    %89 = arith.divf %85, %88 : vector<2x16x16xf32>
    %90 = arith.truncf %89 : vector<2x16x16xf32> to vector<2x16x16xbf16>
    "tpu.trace_start"() <{level = 10 : i32, message = "wnm,wmd->wnd"}> : () -> ()
    %cst_39 = arith.constant dense<0.000000e+00> : vector<2x16x8xf32>
    %91 = tpu.matmul %90, %75, %cst_39 {dimension_numbers = #tpu.dot_dimension_numbers<[2], [1], [1], [2], [0, 0, 0, 1, 1, 2], [0], [0]>} : vector<2x16x16xbf16>, vector<2x16x8xbf16>, vector<2x16x8xf32> -> vector<2x16x8xf32>
    "tpu.trace_stop"() : () -> ()
    %92 = vector.shape_cast %91 : vector<2x16x8xf32> to vector<32x8xf32>
    %c0_40 = arith.constant 0 : index
    %c24 = arith.constant 24 : index
    %93 = vector.load %arg9[%c0_40, %c24] : memref<32x32xf32, #tpu.memory_space<vmem>>, vector<32x8xf32>
    tpu.vector_store %arg9[%c0_40, %c24], %92 {strides = array<i32>} : memref<32x32xf32, #tpu.memory_space<vmem>>, vector<32x8xf32>,
    %c0_41 = arith.constant 0 : index
    %c0_42 = arith.constant 0 : index
    %94 = vector.load %arg9[%c0_41, %c0_42] : memref<32x32xf32, #tpu.memory_space<vmem>>, vector<32x32xf32>
    %95 = arith.truncf %94 : vector<32x32xf32> to vector<32x32xbf16>
    %c0_43 = arith.constant 0 : index
    %c0_44 = arith.constant 0 : index
    %96 = vector.load %arg6[%c0_43, %c0_44] : memref<32x32xbf16, #tpu.memory_space<vmem>>, vector<32x32xbf16>
    %cst_45 = arith.constant dense<0.000000e+00> : vector<32x32xf32>
    %97 = tpu.matmul %95, %96, %cst_45 {dimension_numbers = #tpu.dot_dimension_numbers<[1], [0], [0], [1], [0, 0, 1, 1], [], []>} : vector<32x32xbf16>, vector<32x32xbf16>, vector<32x32xf32> -> vector<32x32xf32>
    %c0_46 = arith.constant 0 : index
    %c0_47 = arith.constant 0 : index
    %98 = vector.load %arg7[%c0_46, %c0_47] : memref<1x32xf32, #tpu.memory_space<vmem>>, vector<1x32xf32>
    %99 = vector.broadcast %98 : vector<1x32xf32> to vector<32x32xf32>
    %100 = arith.addf %97, %99 : vector<32x32xf32>
    %101 = vector.shape_cast %100 : vector<32x32xf32> to vector<2x16x32xf32>
    %102 = arith.truncf %101 : vector<2x16x32xf32> to vector<2x16x32xbf16>
    %c0_48 = arith.constant 0 : index
    %c0_49 = arith.constant 0 : index
    %c0_50 = arith.constant 0 : index
    %c0_51 = arith.constant 0 : index
    %103 = vector.load %arg8[%c0_48, %c0_49, %c0_50, %c0_51] : memref<1x2x16x32xbf16, #tpu.memory_space<vmem>>, vector<1x2x16x32xbf16>
    %104 = vector.shape_cast %103 : vector<1x2x16x32xbf16> to vector<2x16x32xbf16>
    %105 = vector.shape_cast %102 : vector<2x16x32xbf16> to vector<1x2x16x32xbf16>
    tpu.vector_store %arg8[%c0_48, %c0_49, %c0_50, %c0_51], %105 {strides = array<i32>} : memref<1x2x16x32xbf16, #tpu.memory_space<vmem>>, vector<1x2x16x32xbf16>,
    return
  }
  func.func @transform_0(%arg0: i32, %arg1: i32) -> (i32, i32, i32, i32) {
    %c0_i32 = arith.constant 0 : i32
    %c0_i32_0 = arith.constant 0 : i32
    %c0_i32_1 = arith.constant 0 : i32
    return %arg1, %arg0, %c0_i32, %c0_i32_0 : i32, i32, i32, i32
  }
  func.func @transform_1(%arg0: i32, %arg1: i32) -> (i32, i32) {
    %c0_i32 = arith.constant 0 : i32
    %c0_i32_0 = arith.constant 0 : i32
    %c0_i32_1 = arith.constant 0 : i32
    return %c0_i32, %c0_i32_0 : i32, i32
  }
  func.func @transform_2(%arg0: i32, %arg1: i32) -> (i32, i32) {
    %c0_i32 = arith.constant 0 : i32
    %c0_i32_0 = arith.constant 0 : i32
    %c0_i32_1 = arith.constant 0 : i32
    return %c0_i32, %c0_i32_0 : i32, i32
  }
  func.func @transform_3(%arg0: i32, %arg1: i32) -> (i32, i32, i32, i32) {
    %c0_i32 = arith.constant 0 : i32
    %c0_i32_0 = arith.constant 0 : i32
    %c0_i32_1 = arith.constant 0 : i32
    %c0_i32_2 = arith.constant 0 : i32
    return %c0_i32, %arg0, %c0_i32_0, %c0_i32_1 : i32, i32, i32, i32
  }
  func.func @transform_4(%arg0: i32, %arg1: i32) -> (i32, i32) {
    %c0_i32 = arith.constant 0 : i32
    %c0_i32_0 = arith.constant 0 : i32
    %c0_i32_1 = arith.constant 0 : i32
    return %c0_i32, %c0_i32_0 : i32, i32
  }
  func.func @transform_5(%arg0: i32, %arg1: i32) -> (i32, i32) {
    %c0_i32 = arith.constant 0 : i32
    %c0_i32_0 = arith.constant 0 : i32
    %c0_i32_1 = arith.constant 0 : i32
    return %c0_i32, %c0_i32_0 : i32, i32
  }
  func.func @transform_6(%arg0: i32, %arg1: i32) -> (i32, i32, i32, i32) {
    %c0_i32 = arith.constant 0 : i32
    %c0_i32_0 = arith.constant 0 : i32
    %c0_i32_1 = arith.constant 0 : i32
    return %arg1, %arg0, %c0_i32, %c0_i32_0 : i32, i32, i32, i32
  }
}

module attributes {stable_mosaic.version = 11 : i64} {
  func.func @_residual_mlp_kernel(%arg0: i32, %arg1: memref<80x32xf32, #tpu.memory_space<vmem>>, %arg2: memref<80x32xbf16, #tpu.memory_space<vmem>>, %arg3: memref<1x32xf32, #tpu.memory_space<vmem>>, %arg4: memref<1x32xf32, #tpu.memory_space<vmem>>, %arg5: memref<32x128xbf16, #tpu.memory_space<vmem>>, %arg6: memref<1x128xf32, #tpu.memory_space<vmem>>, %arg7: memref<128x32xbf16, #tpu.memory_space<vmem>>, %arg8: memref<1x32xf32, #tpu.memory_space<vmem>>, %arg9: memref<80x32xf32, #tpu.memory_space<vmem>>) attributes {dimension_semantics = [#tpu.dimension_semantics<parallel>], iteration_bounds = array<i64: 2>, scalar_prefetch = 0 : i64, scratch_operands = 0 : i64, tpu.core_type = #tpu.core_type<tc>, window_params = [{transform_indices = @transform_0, window_bounds = array<i64: 80, 32>}, {transform_indices = @transform_1, window_bounds = array<i64: 80, 32>}, {pipeline_mode = #tpu.pipeline_mode<synchronous>, transform_indices = @transform_2, window_bounds = array<i64: 1, 32>}, {pipeline_mode = #tpu.pipeline_mode<synchronous>, transform_indices = @transform_3, window_bounds = array<i64: 1, 32>}, {pipeline_mode = #tpu.pipeline_mode<synchronous>, transform_indices = @transform_4, window_bounds = array<i64: 32, 128>}, {pipeline_mode = #tpu.pipeline_mode<synchronous>, transform_indices = @transform_5, window_bounds = array<i64: 1, 128>}, {pipeline_mode = #tpu.pipeline_mode<synchronous>, transform_indices = @transform_6, window_bounds = array<i64: 128, 32>}, {pipeline_mode = #tpu.pipeline_mode<synchronous>, transform_indices = @transform_7, window_bounds = array<i64: 1, 32>}, {transform_indices = @transform_8, window_bounds = array<i64: 80, 32>}]} {
    %c0 = arith.constant 0 : index
    %c0_0 = arith.constant 0 : index
    %0 = vector.load %arg1[%c0, %c0_0] : memref<80x32xf32, #tpu.memory_space<vmem>>, vector<80x32xf32>
    %c0_1 = arith.constant 0 : index
    %c0_2 = arith.constant 0 : index
    %1 = vector.load %arg2[%c0_1, %c0_2] : memref<80x32xbf16, #tpu.memory_space<vmem>>, vector<80x32xbf16>
    %2 = arith.extf %1 : vector<80x32xbf16> to vector<80x32xf32>
    %3 = arith.addf %0, %2 : vector<80x32xf32>
    %c0_3 = arith.constant 0 : index
    %c0_4 = arith.constant 0 : index
    %4 = vector.load %arg3[%c0_3, %c0_4] : memref<1x32xf32, #tpu.memory_space<vmem>>, vector<1x32xf32>
    %c0_5 = arith.constant 0 : index
    %c0_6 = arith.constant 0 : index
    %5 = vector.load %arg4[%c0_5, %c0_6] : memref<1x32xf32, #tpu.memory_space<vmem>>, vector<1x32xf32>
    %cst = arith.constant dense<0.000000e+00> : vector<80xf32>
    %6 = vector.multi_reduction <add>, %3, %cst [1] : vector<80x32xf32> to vector<80xf32>
    %7 = vector.shape_cast %6 : vector<80xf32> to vector<80x1xf32>
    %cst_7 = arith.constant 3.200000e+01 : f32
    %8 = vector.broadcast %cst_7 : f32 to vector<80x1xf32>
    %9 = arith.divf %7, %8 : vector<80x1xf32>
    %10 = vector.broadcast %9 : vector<80x1xf32> to vector<80x32xf32>
    %11 = arith.subf %3, %10 : vector<80x32xf32>
    %12 = arith.mulf %11, %11 : vector<80x32xf32>
    %cst_8 = arith.constant dense<0.000000e+00> : vector<80xf32>
    %13 = vector.multi_reduction <add>, %12, %cst_8 [1] : vector<80x32xf32> to vector<80xf32>
    %14 = vector.shape_cast %13 : vector<80xf32> to vector<80x1xf32>
    %cst_9 = arith.constant 3.200000e+01 : f32
    %15 = vector.broadcast %cst_9 : f32 to vector<80x1xf32>
    %16 = arith.divf %14, %15 : vector<80x1xf32>
    %cst_10 = arith.constant 9.99999974E-6 : f32
    %17 = vector.broadcast %cst_10 : f32 to vector<80x1xf32>
    %18 = arith.addf %16, %17 : vector<80x1xf32>
    %19 = math.rsqrt %18 : vector<80x1xf32>
    %20 = vector.broadcast %19 : vector<80x1xf32> to vector<80x32xf32>
    %21 = arith.mulf %11, %20 : vector<80x32xf32>
    %22 = vector.broadcast %4 : vector<1x32xf32> to vector<80x32xf32>
    %23 = arith.mulf %21, %22 : vector<80x32xf32>
    %24 = vector.broadcast %5 : vector<1x32xf32> to vector<80x32xf32>
    %25 = arith.addf %23, %24 : vector<80x32xf32>
    %26 = arith.truncf %25 : vector<80x32xf32> to vector<80x32xbf16>
    %c0_11 = arith.constant 0 : index
    %c0_12 = arith.constant 0 : index
    %27 = vector.load %arg5[%c0_11, %c0_12] : memref<32x128xbf16, #tpu.memory_space<vmem>>, vector<32x128xbf16>
    %cst_13 = arith.constant dense<0.000000e+00> : vector<80x128xf32>
    %28 = tpu.matmul %26, %27, %cst_13 {dimension_numbers = #tpu.dot_dimension_numbers<[1], [0], [0], [1], [0, 0, 1, 1], [], []>} : vector<80x32xbf16>, vector<32x128xbf16>, vector<80x128xf32> -> vector<80x128xf32>
    %c0_14 = arith.constant 0 : index
    %c0_15 = arith.constant 0 : index
    %29 = vector.load %arg6[%c0_14, %c0_15] : memref<1x128xf32, #tpu.memory_space<vmem>>, vector<1x128xf32>
    %30 = vector.broadcast %29 : vector<1x128xf32> to vector<80x128xf32>
    %31 = arith.addf %28, %30 : vector<80x128xf32>
    %cst_16 = arith.constant 5.000000e-01 : f32
    %32 = vector.broadcast %cst_16 : f32 to vector<80x128xf32>
    %33 = arith.mulf %32, %31 : vector<80x128xf32>
    %cst_17 = arith.constant 0.707106769 : f32
    %34 = vector.broadcast %cst_17 : f32 to vector<80x128xf32>
    %35 = arith.mulf %31, %34 : vector<80x128xf32>
    %36 = math.absf %35 : vector<80x128xf32>
    %cst_18 = arith.constant 0.327591091 : f32
    %37 = vector.broadcast %cst_18 : f32 to vector<80x128xf32>
    %38 = arith.mulf %37, %36 : vector<80x128xf32>
    %cst_19 = arith.constant 1.000000e+00 : f32
    %39 = vector.broadcast %cst_19 : f32 to vector<80x128xf32>
    %40 = arith.addf %39, %38 : vector<80x128xf32>
    %cst_20 = arith.constant 1.000000e+00 : f32
    %41 = vector.broadcast %cst_20 : f32 to vector<80x128xf32>
    %42 = arith.divf %41, %40 : vector<80x128xf32>
    %cst_21 = arith.constant 1.06140542 : f32
    %43 = vector.broadcast %cst_21 : f32 to vector<80x128xf32>
    %44 = arith.mulf %43, %42 : vector<80x128xf32>
    %cst_22 = arith.constant -1.45315206 : f32
    %45 = vector.broadcast %cst_22 : f32 to vector<80x128xf32>
    %46 = arith.addf %44, %45 : vector<80x128xf32>
    %47 = arith.mulf %46, %42 : vector<80x128xf32>
    %cst_23 = arith.constant 1.42141378 : f32
    %48 = vector.broadcast %cst_23 : f32 to vector<80x128xf32>
    %49 = arith.addf %47, %48 : vector<80x128xf32>
    %50 = arith.mulf %49, %42 : vector<80x128xf32>
    %cst_24 = arith.constant -0.284496725 : f32
    %51 = vector.broadcast %cst_24 : f32 to vector<80x128xf32>
    %52 = arith.addf %50, %51 : vector<80x128xf32>
    %53 = arith.mulf %52, %42 : vector<80x128xf32>
    %cst_25 = arith.constant 0.254829586 : f32
    %54 = vector.broadcast %cst_25 : f32 to vector<80x128xf32>
    %55 = arith.addf %53, %54 : vector<80x128xf32>
    %56 = arith.mulf %55, %42 : vector<80x128xf32>
    %cst_26 = arith.constant 0.000000e+00 : f32
    %57 = vector.broadcast %cst_26 : f32 to vector<80x128xf32>
    %58 = arith.subf %57, %36 : vector<80x128xf32>
    %59 = arith.mulf %58, %36 : vector<80x128xf32>
    %60 = math.exp %59 : vector<80x128xf32>
    %61 = arith.mulf %56, %60 : vector<80x128xf32>
    %cst_27 = arith.constant 1.000000e+00 : f32
    %62 = vector.broadcast %cst_27 : f32 to vector<80x128xf32>
    %63 = arith.subf %62, %61 : vector<80x128xf32>
    %cst_28 = arith.constant 0.000000e+00 : f32
    %64 = vector.broadcast %cst_28 : f32 to vector<80x128xf32>
    %65 = arith.cmpf oge, %35, %64 : vector<80x128xf32>
    %cst_29 = arith.constant 0.000000e+00 : f32
    %66 = vector.broadcast %cst_29 : f32 to vector<80x128xf32>
    %67 = arith.subf %66, %63 : vector<80x128xf32>
    %68 = arith.select %65, %63, %67 : vector<80x128xi1>, vector<80x128xf32>
    %cst_30 = arith.constant 1.000000e+00 : f32
    %69 = vector.broadcast %cst_30 : f32 to vector<80x128xf32>
    %70 = arith.addf %69, %68 : vector<80x128xf32>
    %71 = arith.mulf %33, %70 : vector<80x128xf32>
    %72 = arith.truncf %71 : vector<80x128xf32> to vector<80x128xbf16>
    %c0_31 = arith.constant 0 : index
    %c0_32 = arith.constant 0 : index
    %73 = vector.load %arg7[%c0_31, %c0_32] : memref<128x32xbf16, #tpu.memory_space<vmem>>, vector<128x32xbf16>
    %cst_33 = arith.constant dense<0.000000e+00> : vector<80x32xf32>
    %74 = tpu.matmul %72, %73, %cst_33 {dimension_numbers = #tpu.dot_dimension_numbers<[1], [0], [0], [1], [0, 0, 1, 1], [], []>} : vector<80x128xbf16>, vector<128x32xbf16>, vector<80x32xf32> -> vector<80x32xf32>
    %c0_34 = arith.constant 0 : index
    %c0_35 = arith.constant 0 : index
    %75 = vector.load %arg8[%c0_34, %c0_35] : memref<1x32xf32, #tpu.memory_space<vmem>>, vector<1x32xf32>
    %76 = vector.broadcast %75 : vector<1x32xf32> to vector<80x32xf32>
    %77 = arith.addf %74, %76 : vector<80x32xf32>
    %78 = arith.addf %3, %77 : vector<80x32xf32>
    %c0_36 = arith.constant 0 : index
    %c0_37 = arith.constant 0 : index
    %79 = vector.load %arg9[%c0_36, %c0_37] : memref<80x32xf32, #tpu.memory_space<vmem>>, vector<80x32xf32>
    tpu.vector_store %arg9[%c0_36, %c0_37], %78 {strides = array<i32>} : memref<80x32xf32, #tpu.memory_space<vmem>>, vector<80x32xf32>,
    return
  }
  func.func @transform_0(%arg0: i32) -> (i32, i32) {
    %c0_i32 = arith.constant 0 : i32
    %c0_i32_0 = arith.constant 0 : i32
    return %arg0, %c0_i32 : i32, i32
  }
  func.func @transform_1(%arg0: i32) -> (i32, i32) {
    %c0_i32 = arith.constant 0 : i32
    %c0_i32_0 = arith.constant 0 : i32
    return %arg0, %c0_i32 : i32, i32
  }
  func.func @transform_2(%arg0: i32) -> (i32, i32) {
    %c0_i32 = arith.constant 0 : i32
    %c0_i32_0 = arith.constant 0 : i32
    %c0_i32_1 = arith.constant 0 : i32
    return %c0_i32, %c0_i32_0 : i32, i32
  }
  func.func @transform_3(%arg0: i32) -> (i32, i32) {
    %c0_i32 = arith.constant 0 : i32
    %c0_i32_0 = arith.constant 0 : i32
    %c0_i32_1 = arith.constant 0 : i32
    return %c0_i32, %c0_i32_0 : i32, i32
  }
  func.func @transform_4(%arg0: i32) -> (i32, i32) {
    %c0_i32 = arith.constant 0 : i32
    %c0_i32_0 = arith.constant 0 : i32
    %c0_i32_1 = arith.constant 0 : i32
    return %c0_i32, %c0_i32_0 : i32, i32
  }
  func.func @transform_5(%arg0: i32) -> (i32, i32) {
    %c0_i32 = arith.constant 0 : i32
    %c0_i32_0 = arith.constant 0 : i32
    %c0_i32_1 = arith.constant 0 : i32
    return %c0_i32, %c0_i32_0 : i32, i32
  }
  func.func @transform_6(%arg0: i32) -> (i32, i32) {
    %c0_i32 = arith.constant 0 : i32
    %c0_i32_0 = arith.constant 0 : i32
    %c0_i32_1 = arith.constant 0 : i32
    return %c0_i32, %c0_i32_0 : i32, i32
  }
  func.func @transform_7(%arg0: i32) -> (i32, i32) {
    %c0_i32 = arith.constant 0 : i32
    %c0_i32_0 = arith.constant 0 : i32
    %c0_i32_1 = arith.constant 0 : i32
    return %c0_i32, %c0_i32_0 : i32, i32
  }
  func.func @transform_8(%arg0: i32) -> (i32, i32) {
    %c0_i32 = arith.constant 0 : i32
    %c0_i32_0 = arith.constant 0 : i32
    return %arg0, %c0_i32 : i32, i32
  }
}

</mosaic_0001>

<bundles_post_ra>
// kernel: _lambda_.6
= control target key start
LH: loop header
LB: loop body
LE: loop exit
PB: predicated region body
PF: predicated region fallthrough
CT: control target
= control target key end

     0   :  { %s544_s12 = smov 0   ;;  %s687_s0 = inlined_call_operand.vmem [shape: f32[160,32], index: 0, kind: input, shape index: {}]   ;;  %s688_s1 = inlined_call_operand.vmem [shape: f32[1,32], index: 1, kind: input, shape index: {}]   ;;  %s689_s2 = inlined_call_operand.vmem [shape: f32[1,32], index: 2, kind: input, shape index: {}]   ;;  %s690_s3 = inlined_call_operand.vmem [shape: bf16[160,32], index: 3, kind: output, shape index: {}]  }
   0x1 LB: > { %s457_s13 = sadd.s32 4294967295, %s522_s12   ;;  %p461_p0 = scmp.ge.s32.totalorder %s522_s12, 1  ;;  %s522_s12 = sphi %s544_s12, %s13_s12  }
   0x2   : > { %p138_p1 = scmp.lt.s32.totalorder %s522_s12, 3 }
   0x4   : > { %p139_p2 = pnand %p461_p0, %p138_p1 }
   0x5   : > { %s162_s14 = smul.u32 (!%p139_p2), 10, %s457_s13 }
   0x6   : > { %142 = sbr.rel (%p139_p2) target bundleno = 346 (0x15a), region = 32 }
   0x7   : > { %p163_p3 = scmp.lt.s32.totalorder (!%p139_p2), %s162_s14, 19 }
   0xb   : > { %s692_s14 = smov (!%p163_p3, %s162_s14), 19  ;;  %vm186_vm0 = vcmask 261120   ;;  %vm390_vm1 = vcmask 257024  }
   0xc   : > { %s462_s15 = sshll.u32 %s692_s14, 3  ;;  %s463_s23 = sshll.u32 %s692_s14, 2 }
   0xd   : > { %s166_s18 = scalar_lea.vmem %s687_s0, %s462_s15  ;;  %s636_s26 = scalar_lea.vmem %s690_s3, %s463_s23 }
   0xe   : > { %v174_v0 = vld [vmem:[%s166_s18] sm:$0xff]  ;;  %v176_v1 = vld [vmem:[%s166_s18 + $0x10] sm:$0xff]  ;;  %v175_v2 = vld [vmem:[%s166_s18 + $0x8] sm:$0xff] }
   0xf   : > { %v187_v3 = vsel %vm186_vm0, %v174_v0, 0.0  ;;  %v193_v4 = vsel %vm186_vm0, %v176_v1, 0.0  ;;  %v177_v5 = vld [vmem:[%s166_s18 + $0x18] sm:$0xff]  ;;  %v190_v6 = vsel %vm186_vm0, %v175_v2, 0.0  ;;  %v178_v8 = vld [vmem:[%s166_s18 + $0x20] sm:$0xff]  ;;  %v179_v9 = vld [vmem:[%s166_s18 + $0x28] sm:$0xff] }
  0x10   : > { %188 = vadd.xlane.f32.xlu0 %v187_v3  ;;  %194 = vadd.xlane.f32.xlu1 %v193_v4  ;;  %v196_v7 = vsel %vm186_vm0, %v177_v5, 0.0  ;;  %v199_v10 = vsel %vm186_vm0, %v178_v8, 0.0  ;;  %v202_v11 = vsel %vm186_vm0, %v179_v9, 0.0  ;;  %v180_v12 = vld [vmem:[%s166_s18 + $0x30] sm:$0xff]  ;;  %v181_v13 = vld [vmem:[%s166_s18 + $0x38] sm:$0xff]  ;;  %v182_v16 = vld [vmem:[%s166_s18 + $0x40] sm:$0xff] }
  0x11   : > { %v205_v14 = vsel %vm186_vm0, %v180_v12, 0.0  ;;  %v208_v15 = vsel %vm186_vm0, %v181_v13, 0.0  ;;  %v183_v17 = vld [vmem:[%s166_s18 + $0x48] sm:$0xff]  ;;  %v211_v18 = vsel %vm186_vm0, %v182_v16, 0.0 }
  0x12   : > { %v214_v19 = vsel %vm186_vm0, %v183_v17, 0.0 }
  0x14   : > { %191 = vadd.xlane.f32.xlu0 %v190_v6  ;;  %197 = vadd.xlane.f32.xlu1 %v196_v7 }
  0x18   : > { %200 = vadd.xlane.f32.xlu0 %v199_v10  ;;  %203 = vadd.xlane.f32.xlu1 %v202_v11 }
  0x1c   : > { %206 = vadd.xlane.f32.xlu0 %v205_v14  ;;  %209 = vadd.xlane.f32.xlu1 %v208_v15 }
  0x20   : > { %212 = vadd.xlane.f32.xlu0 %v211_v18  ;;  %215 = vadd.xlane.f32.xlu1 %v214_v19 }
  0x99   : > { %v189_v20 = vpop.xlane.xlu0 %188  ;;  %v195_v21 = vpop.xlane.xlu1 %194 }
  0x9a   : > { %v218_v22 = vmul.f32 0.03125, %v189_v20  ;;  %v220_v23 = vmul.f32 0.03125, %v195_v21 }
  0x9c   : > { %v568_v24 = vsub.f32 %v174_v0, %v218_v22  ;;  %v570_v25 = vsub.f32 %v176_v1, %v220_v23 }
  0x9d   : > { %v192_v26 = vpop.xlane.xlu0 %191  ;;  %v198_v27 = vpop.xlane.xlu1 %197 }
  0x9e   : > { %v219_v28 = vmul.f32 0.03125, %v192_v26  ;;  %v221_v29 = vmul.f32 0.03125, %v198_v27  ;;  %v238_v30 = vmul.f32 %v568_v24, %v568_v24  ;;  %v240_v31 = vmul.f32 %v570_v25, %v570_v25 }
  0xa0   : > { %v576_v32 = vsub.f32 %v175_v2, %v219_v28  ;;  %v578_v33 = vsub.f32 %v177_v5, %v221_v29  ;;  %v248_v34 = vsel %vm186_vm0, %v238_v30, 0.0  ;;  %v254_v37 = vsel %vm186_vm0, %v240_v31, 0.0 }
  0xa1   : > { %249 = vadd.xlane.f32.xlu0 %v248_v34  ;;  %v201_v35 = vpop.xlane.xlu0 %200  ;;  %v204_v36 = vpop.xlane.xlu1 %203 }
  0xa2   : > { %v222_v38 = vmul.f32 0.03125, %v201_v35  ;;  %v223_v39 = vmul.f32 0.03125, %v204_v36  ;;  %v239_v40 = vmul.f32 %v576_v32, %v576_v32  ;;  %v241_v41 = vmul.f32 %v578_v33, %v578_v33  ;;  %v621_v36 = vld [vmem:[%s688_s1] ss:$0 sm:$0xff] }
  0xa4   : > { %v586_v42 = vsub.f32 %v178_v8, %v222_v38  ;;  %v588_v43 = vsub.f32 %v179_v9, %v223_v39  ;;  %v251_v44 = vsel %vm186_vm0, %v239_v40, 0.0  ;;  %v257_v47 = vsel %vm186_vm0, %v241_v41, 0.0  ;;  %v627_v40 = vld [vmem:[%s689_s2] ss:$0 sm:$0xff] }
  0xa5   : > { %255 = vadd.xlane.f32.xlu0 %v254_v37  ;;  %252 = vadd.xlane.f32.xlu1 %v251_v44  ;;  %v207_v45 = vpop.xlane.xlu0 %206  ;;  %v210_v46 = vpop.xlane.xlu1 %209 }
  0xa6   : > { %v224_v48 = vmul.f32 0.03125, %v207_v45  ;;  %v225_v49 = vmul.f32 0.03125, %v210_v46  ;;  %v242_v50 = vmul.f32 %v586_v42, %v586_v42  ;;  %v243_v51 = vmul.f32 %v588_v43, %v588_v43 }
  0xa8   : > { %v596_v52 = vsub.f32 %v180_v12, %v224_v48  ;;  %v598_v53 = vsub.f32 %v181_v13, %v225_v49  ;;  %v260_v54 = vsel %vm186_vm0, %v242_v50, 0.0  ;;  %v263_v57 = vsel %vm186_vm0, %v243_v51, 0.0 }
  0xa9   : > { %258 = vadd.xlane.f32.xlu1 %v257_v47  ;;  %261 = vadd.xlane.f32.xlu0 %v260_v54  ;;  %v213_v55 = vpop.xlane.xlu0 %212  ;;  %v216_v56 = vpop.xlane.xlu1 %215 }
  0xaa   : > { %v226_v58 = vmul.f32 0.03125, %v213_v55  ;;  %v227_v59 = vmul.f32 0.03125, %v216_v56  ;;  %v244_v60 = vmul.f32 %v596_v52, %v596_v52  ;;  %v245_v61 = vmul.f32 %v598_v53, %v598_v53 }
  0xac   : > { %v606_v62 = vsub.f32 %v182_v16, %v226_v58  ;;  %v608_v63 = vsub.f32 %v183_v17, %v227_v59  ;;  %v266_v0 = vsel %vm186_vm0, %v244_v60, 0.0  ;;  %v269_v1 = vsel %vm186_vm0, %v245_v61, 0.0 }
  0xad   : > { %264 = vadd.xlane.f32.xlu1 %v263_v57  ;;  %267 = vadd.xlane.f32.xlu0 %v266_v0 }
  0xae   : > { %v246_v2 = vmul.f32 %v606_v62, %v606_v62  ;;  %v247_v3 = vmul.f32 %v608_v63, %v608_v63 }
  0xb0   : > { %v272_v4 = vsel %vm186_vm0, %v246_v2, 0.0  ;;  %v275_v5 = vsel %vm186_vm0, %v247_v3, 0.0 }
  0xb1   : > { %270 = vadd.xlane.f32.xlu1 %v269_v1  ;;  %273 = vadd.xlane.f32.xlu0 %v272_v4 }
  0xb5   : > { %276 = vadd.xlane.f32.xlu1 %v275_v5 }
 0x12a   : > { %v250_v6 = vpop.xlane.xlu0 %249 }
 0x12b   : > { %v278_v7 = vmul.f32 0.03125, %v250_v6 }
 0x12d   : > { %v288_v8 = vadd.f32 1e-05, %v278_v7 }
 0x12e   : > { %v253_v9 = vpop.xlane.xlu1 %252  ;;  %v256_v10 = vpop.xlane.xlu0 %255 }
 0x12f   : > { %496 = vrsqrt.f32 %v288_v8  ;;  %v279_v11 = vmul.f32 0.03125, %v253_v9  ;;  %v280_v12 = vmul.f32 0.03125, %v256_v10 }
 0x131   : > { %v289_v13 = vadd.f32 1e-05, %v279_v11  ;;  %v290_v14 = vadd.f32 1e-05, %v280_v12 }
 0x132   : > { %v259_v15 = vpop.xlane.xlu1 %258  ;;  %v262_v16 = vpop.xlane.xlu0 %261 }
 0x133   : > { %498 = vrsqrt.f32 %v289_v13  ;;  %v281_v17 = vmul.f32 0.03125, %v259_v15  ;;  %v282_v18 = vmul.f32 0.03125, %v262_v16 }
 0x134   : > { %500 = vrsqrt.f32 %v290_v14 }
 0x135   : > { %v291_v19 = vadd.f32 1e-05, %v281_v17  ;;  %v292_v20 = vadd.f32 1e-05, %v282_v18 }
 0x136   : > { %v265_v21 = vpop.xlane.xlu1 %264  ;;  %v268_v22 = vpop.xlane.xlu0 %267 }
 0x137   : > { %502 = vrsqrt.f32 %v291_v19  ;;  %v283_v23 = vmul.f32 0.03125, %v265_v21  ;;  %v284_v26 = vmul.f32 0.03125, %v268_v22 }
 0x138   : > { %504 = vrsqrt.f32 %v292_v20 }
 0x139   : > { %v293_v27 = vadd.f32 1e-05, %v283_v23  ;;  %v294_v28 = vadd.f32 1e-05, %v284_v26 }
 0x13a   : > { %v271_v29 = vpop.xlane.xlu1 %270  ;;  %v274_v30 = vpop.xlane.xlu0 %273 }
 0x13b   : > { %506 = vrsqrt.f32 %v293_v27  ;;  %v285_v31 = vmul.f32 0.03125, %v271_v29  ;;  %v286_v34 = vmul.f32 0.03125, %v274_v30 }
 0x13c   : > { %v497_v35 = vpop.eup %496  ;;  %508 = vrsqrt.f32 %v294_v28 }
 0x13d   : > { %v308_v37 = vmul.f32 %v497_v35, %v568_v24  ;;  %v295_v38 = vadd.f32 1e-05, %v285_v31  ;;  %v296_v39 = vadd.f32 1e-05, %v286_v34 }
 0x13e   : > { %v277_v41 = vpop.xlane.xlu1 %276 }
 0x13f   : > { %v324_v44 = vmul.f32 %v621_v36, %v308_v37  ;;  %510 = vrsqrt.f32 %v295_v38  ;;  %v287_v45 = vmul.f32 0.03125, %v277_v41 }
 0x140   : > { %v499_v46 = vpop.eup %498  ;;  %512 = vrsqrt.f32 %v296_v39 }
 0x141   : > { %v501_v47 = vpop.eup %500  ;;  %v340_v48 = vadd.f32 %v627_v40, %v324_v44  ;;  %v309_v24 = vmul.f32 %v499_v46, %v576_v32  ;;  %v297_v49 = vadd.f32 1e-05, %v287_v45 }
 0x142   : > { %v310_v50 = vmul.f32 %v501_v47, %v570_v25 }
 0x143   : > { %v478_v51 = vpack.c.bf16 %v340_v48, %v340_v48  ;;  %v325_v54 = vmul.f32 %v621_v36, %v309_v24  ;;  %514 = vrsqrt.f32 %v297_v49 }
 0x144   : > { %v503_v55 = vpop.eup %502  ;;  %v326_v56 = vmul.f32 %v621_v36, %v310_v50 }
 0x145   : > { %v505_v32 = vpop.eup %504  ;;  %391 = vst.msk [vmem:[%s636_s26] sm:$0xf] %vm390_vm1, %v478_v51  ;;  %v341_v57 = vadd.f32 %v627_v40, %v325_v54  ;;  %v311_v58 = vmul.f32 %v503_v55, %v578_v33 }
 0x146   : > { %v342_v59 = vadd.f32 %v627_v40, %v326_v56  ;;  %v312_v25 = vmul.f32 %v505_v32, %v586_v42 }
 0x147   : > { %v479_v60 = vpack.c.bf16 %v341_v57, %v341_v57  ;;  %v327_v61 = vmul.f32 %v621_v36, %v311_v58 }
 0x148   : > { %v507_v0 = vpop.eup %506  ;;  %v480_v1 = vpack.c.bf16 %v342_v59, %v342_v59  ;;  %v328_v2 = vmul.f32 %v621_v36, %v312_v25 }
 0x149   : > { %v509_v3 = vpop.eup %508  ;;  %392 = vst.msk [vmem:[%s636_s26 + $0x4] sm:$0xf] %vm390_vm1, %v479_v60  ;;  %v343_v4 = vadd.f32 %v627_v40, %v327_v61  ;;  %v313_v33 = vmul.f32 %v507_v0, %v588_v43 }
 0x14a   : > { %393 = vst.msk [vmem:[%s636_s26 + $0x8] sm:$0xf] %vm390_vm1, %v480_v1  ;;  %v344_v42 = vadd.f32 %v627_v40, %v328_v2  ;;  %v314_v5 = vmul.f32 %v509_v3, %v596_v52 }
 0x14b   : > { %v481_v6 = vpack.c.bf16 %v343_v4, %v343_v4  ;;  %v329_v7 = vmul.f32 %v621_v36, %v313_v33 }
 0x14c   : > { %v511_v8 = vpop.eup %510  ;;  %v482_v9 = vpack.c.bf16 %v344_v42, %v344_v42  ;;  %v330_v10 = vmul.f32 %v621_v36, %v314_v5 }
 0x14d   : > { %v513_v11 = vpop.eup %512  ;;  %394 = vst.msk [vmem:[%s636_s26 + $0xc] sm:$0xf] %vm390_vm1, %v481_v6  ;;  %v345_v43 = vadd.f32 %v627_v40, %v329_v7  ;;  %v315_v12 = vmul.f32 %v511_v8, %v598_v53 }
 0x14e   : > { %395 = vst.msk [vmem:[%s636_s26 + $0x10] sm:$0xf] %vm390_vm1, %v482_v9  ;;  %v346_v52 = vadd.f32 %v627_v40, %v330_v10  ;;  %v316_v13 = vmul.f32 %v513_v11, %v606_v62 }
 0x14f   : > { %v483_v14 = vpack.c.bf16 %v345_v43, %v345_v43  ;;  %v331_v15 = vmul.f32 %v621_v36, %v315_v12 }
 0x150   : > { %v515_v16 = vpop.eup %514  ;;  %v484_v17 = vpack.c.bf16 %v346_v52, %v346_v52  ;;  %v332_v18 = vmul.f32 %v621_v36, %v316_v13 }
 0x151   : > { %396 = vst.msk [vmem:[%s636_s26 + $0x14] sm:$0xf] %vm390_vm1, %v483_v14  ;;  %v347_v53 = vadd.f32 %v627_v40, %v331_v15  ;;  %v317_v19 = vmul.f32 %v515_v16, %v608_v63 }
 0x152   : > { %397 = vst.msk [vmem:[%s636_s26 + $0x18] sm:$0xf] %vm390_vm1, %v484_v17  ;;  %v348_v20 = vadd.f32 %v627_v40, %v332_v18 }
 0x153   : > { %v485_v62 = vpack.c.bf16 %v347_v53, %v347_v53  ;;  %v333_v21 = vmul.f32 %v621_v36, %v317_v19 }
 0x154   : > { %v486_v22 = vpack.c.bf16 %v348_v20, %v348_v20 }
 0x155   : > { %398 = vst.msk [vmem:[%s636_s26 + $0x1c] sm:$0xf] %vm390_vm1, %v485_v62  ;;  %v349_v23 = vadd.f32 %v627_v40, %v333_v21 }
 0x156   : > { %399 = vst.msk [vmem:[%s636_s26 + $0x20] sm:$0xf] %vm390_vm1, %v486_v22 }
 0x157   : > { %v487_v26 = vpack.c.bf16 %v349_v23, %v349_v23 }
 0x159   : > { %400 = vst.msk [vmem:[%s636_s26 + $0x24] sm:$0xf] %vm390_vm1, %v487_v26 }
 0x15a PF: > { %s13_s12 = sadd.s32 1, %s522_s12  }
 0x15b   : > { %p10_p4 = scmp.ge.s32.totalorder %s13_s12, 4  }
 0x15d   :  { %12 = sbr.rel (!%p10_p4) target bundleno = 1 (0x1), region = 62 }

// kernel: _lambda_.7
= control target key start
LH: loop header
LB: loop body
LE: loop exit
PB: predicated region body
PF: predicated region fallthrough
CT: control target
= control target key end

     0   :  { %s2141_s21 = smov 0   ;;  %s2143_s22 = smov 0   ;;  %s2399_s0 = inlined_call_operand.vmem [shape: bf16[6,2,16,32], index: 0, kind: input, shape index: {}]   ;;  %s2400_s1 = inlined_call_operand.vmem [shape: bf16[32,96], index: 1, kind: input, shape index: {}]   ;;  %s2401_s2 = inlined_call_operand.vmem [shape: f32[1,96], index: 2, kind: input, shape index: {}]   ;;  %s2402_s3 = inlined_call_operand.vmem [shape: bf16[4,2,16,16], index: 3, kind: input, shape index: {}]   ;;  %s2403_s4 = inlined_call_operand.vmem [shape: bf16[32,32], index: 4, kind: input, shape index: {}]   ;;  %s2404_s5 = inlined_call_operand.vmem [shape: f32[1,32], index: 5, kind: input, shape index: {}]   ;;  %s2405_s6 = inlined_call_operand.vmem [shape: bf16[6,2,16,32], index: 6, kind: output, shape index: {}]  }
   0x1   :  { %s2145_s23 = smov 0  }
   0x2 LB: > { %s25_s24 = sadd.s32 1, %s2084_s22  ;;  %p1708_p0 = scmp.ge.s32.totalorder %s2088_s23, 1  ;;  %s2088_s23 = sphi %s2145_s23, %s16_s23   ;;  %s2084_s22 = sphi %s2143_s22, %s2407_s22   ;;  %s2080_s21 = sphi %s2141_s21, %s2406_s21  }
   0x3   : > { %p26_p1 = scmp.ge.s32.totalorder %s25_s24, 6  ;;  %p246_p2 = scmp.lt.s32.totalorder %s2088_s23, 7 }
   0x5   : > { %s2409_s24 = smov (%p26_p1, %s25_s24), 0  ;;  %p247_p3 = pnand %p1708_p0, %p246_p2 }
   0x6   : > { %p293_p4 = scmp.lt.s32.totalorder (!%p247_p3), %s2080_s21, 5  ;;  %s2092_s11 = smov (!%p247_p3), 96  }
   0x7   : > { %250 = sbr.rel (%p247_p3) target bundleno = 2989 (0xbad), region = 44  ;;  %s2093_s16 = smov (!%p247_p3), 64  }
   0x8   : > { %s2094_s17 = smov (!%p247_p3), 88   ;;  %s2095_s18 = smov (!%p247_p3), 120  }
   0x9   : > { %s2096_s27 = smov (!%p247_p3), 56   ;;  %s2097_s28 = smov (!%p247_p3), 80  }
   0xa   : > { %s2098_s30 = smov (!%p247_p3), 112   ;;  %s2100_s12 = smov (!%p247_p3), 72  }
   0xb   : > { %s2101_s13 = smov (!%p247_p3), 104   ;;  %s2103_s19 = smov (!%p247_p3), 8  }
   0xc   : > { %v1996_v0 = vld [vmem:[%s2400_s1 + $0x8] sm:$0xff]   ;;  %v1997_v1 = vld [vmem:[%s2400_s1] sm:$0xff]   ;;  %s2411_s21 = smov (!%p293_p4, %s2080_s21), 5  ;;  %vm359_vm0 = vcmask 261120   ;;  %v2090_v4 = vmov 0.0   ;;  %vm2091_vm1 = vmmov 0  }
   0xd   : > { %1844 = vmatprep.subr.bf16.mxu0 %v1996_v0  ;;  %s1759_s29 = sshll.u32 %s2411_s21, 4  ;;  %1852 = vmatprep.subr.bf16.mxu1 %v2090_v4  ;;  %v1713_v8 = vld [vmem:[%s2401_s2] ss:$0 sm:$0xff]  ;;  %vm428_vm2 = vcmask 64512   ;;  %v1797_v22 = vld [vmem:[%s2402_s3 + $0x8] sm:$0xff]   ;;  %vm526_vm3 = vcmask 130048  }
   0xe   : > { %1845 = vmatpush3.bf16.msra.mxu0 %v1996_v0  ;;  %s301_s8 = scalar_lea.vmem %s2399_s0, %s1759_s29  ;;  %1854 = vmatprep.mubr.msk.bf16.mxu1 %vm2091_vm1, %v2090_v4  ;;  %v1766_v20 = vld [vmem:[%s2402_s3] sm:$0xff]   ;;  %v1771_v26 = vunpack.c.l.bf16 %v1797_v22  ;;  %v1772_v33 = vunpack.c.h.bf16 %v1797_v22  ;;  %s2104_s20 = smov 16   ;;  %vm938_vm4 = vcmask 130112   ;;  %vm1210_vm5 = vcmask 195712  }
   0xf   : > { %1846 = vmatprep.subr.bf16.mxu0 %v1997_v1  ;;  %v1998_v2 = vld [vmem:[%s301_s8] sm:$0xff]   ;;  %v1999_v3 = vld [vmem:[%s301_s8 + $0x8] sm:$0xff]   ;;  %v1767_v21 = vunpack.c.l.bf16 %v1766_v20  ;;  %v1768_v25 = vunpack.c.h.bf16 %v1766_v20  ;;  %vm1482_vm6 = vcmask 261312   ;;  %vm1587_vm7 = vcmask 257024  }
  0x10   : > { %1848 = vmatprep.mubr.msk.bf16.mxu0 %vm359_vm0, %v1998_v2 }
  0x12   : > { %1847 = vmatpush3.bf16.msra.mxu0 %v1997_v1 }
  0x13   : > { %1858 = vmatprep.subr.bf16.mxu0 %v2090_v4 }
  0x15   : > { %1849 = vmatmul.mubr.msk.bf16.vlgmr.msra.gmra.mxu0 %vm359_vm0, %v1999_v3 }
  0x16   : > { %1860 = vmatprep.mubr.msk.bf16.mxu0 %vm2091_vm1, %v2090_v4 }
  0xd5   : > { %v1850_v5 = vpop.f32.mrf.mxu0 }
  0xd6   : > { %v409_v14 = vadd.f32 %v1850_v5, %v1713_v8 }
  0xd7   : > { %v400_v6 = vpop.f32.mrf.mxu0 }
  0xd8   : > { %v401_v10 = vadd.f32 %v1713_v8, %v400_v6 }
  0xd9   : > { %v1851_v7 = vpop.f32.mrf.mxu0 }
  0xda   : > { %v412_v12 = vadd.f32 %v1851_v7, %v1713_v8 }
  0xdb   : > { %v403_v9 = vpop.f32.mrf.mxu0 }
  0xdc   : > { %v404_v11 = vadd.f32 %v1713_v8, %v403_v9  ;;  %v2187_v15 = vpack.c.bf16 %v412_v12, %v409_v14 }
  0xde   : > { %v2184_v13 = vpack.c.bf16 %v404_v11, %v401_v10 }
  0xe0   : > { %426 = vrot.lane.b32.xlu0 %v2184_v13, %s2092_s11 }
  0xe4   : > { %477 = vrot.lane.b32.xlu0 %v2187_v15, %s2092_s11  ;;  %s2099_s11 = smov 48  }
 0x152   : > { %v427_v16 = vpop.permute.xlu0 %426 }
 0x153   : > { %v433_v17 = vsel %vm428_vm2, %v427_v16, 0 }
 0x154   : > { %1853 = vmatpush3.bf16.xpose.msra.mxu1 %v433_v17 }
 0x155   : > { %1864 = vmatprep.subr.bf16.mxu1 %v2090_v4 }
 0x156   : > { %v478_v18 = vpop.permute.xlu0 %477 }
 0x157   : > { %v483_v19 = vsel %vm428_vm2, %v478_v18, 0 }
 0x158   : > { %1859 = vmatpush3.bf16.xpose.msra.mxu0 %v483_v19 }
 0x159   : > { %1870 = vmatprep.subr.bf16.mxu0 %v2090_v4 }
 0x15b   : > { %1855 = vmatmul.mubr.msk.bf16.vlgmr.msra.gmra.mxu1 %vm428_vm2, %v2184_v13 }
 0x15c   : > { %1866 = vmatprep.mubr.msk.bf16.mxu1 %vm2091_vm1, %v2090_v4 }
 0x15f   : > { %1861 = vmatmul.mubr.msk.bf16.vlgmr.msra.gmra.mxu0 %vm428_vm2, %v2187_v15 }
 0x160   : > { %1872 = vmatprep.mubr.msk.bf16.mxu0 %vm2091_vm1, %v2090_v4 }
 0x21b   : > { %v469_v23 = vpop.f32.mrf.mxu1 }
 0x21c   : > { %v470_v24 = vadd.f32 %v1767_v21, %v469_v23 }
 0x21d   : > { %v1856_v27 = vpop.f32.mrf.mxu1 }
 0x21e   : > { %v527_v28 = vsel %vm526_vm3, %v470_v24, -inf }
 0x21f   : > { %528 = vmax.xlane.f32.xlu1 %v527_v28  ;;  %v472_v29 = vpop.f32.mrf.mxu1  ;;  %v519_v30 = vpop.f32.mrf.mxu0 }
 0x220   : > { %v473_v31 = vadd.f32 %v1768_v25, %v472_v29  ;;  %v520_v32 = vadd.f32 %v1771_v26, %v519_v30  ;;  %v1798_v29 = vld [vmem:[%s2402_s3 + $0x10] sm:$0xff]  }
 0x221   : > { %v1857_v34 = vpop.f32.mrf.mxu1  ;;  %v1862_v35 = vpop.f32.mrf.mxu0 }
 0x222   : > { %v530_v36 = vsel %vm526_vm3, %v473_v31, -inf  ;;  %v533_v37 = vsel %vm526_vm3, %v520_v32, -inf }
 0x223   : > { %531 = vmax.xlane.f32.xlu1 %v530_v36  ;;  %534 = vmax.xlane.f32.xlu0 %v533_v37  ;;  %v522_v38 = vpop.f32.mrf.mxu0 }
 0x224   : > { %v523_v39 = vadd.f32 %v1772_v33, %v522_v38  ;;  %v1775_v33 = vunpack.c.l.bf16 %v1798_v29 }
 0x225   : > { %v1863_v40 = vpop.f32.mrf.mxu0 }
 0x226   : > { %v536_v41 = vsel %vm526_vm3, %v523_v39, -inf  ;;  %v1776_v40 = vunpack.c.h.bf16 %v1798_v29 }
 0x227   : > { %537 = vmax.xlane.f32.xlu1 %v536_v41 }
 0x238   : > { %573 = vrot.lane.b32.xlu1 %v2184_v13, %s2093_s16 }
 0x239   : > { %620 = vrot.lane.b32.xlu0 %v2187_v15, %s2093_s16 }
 0x23c   : > { %682 = vrot.lane.b32.xlu1 %v2184_v13, %s2094_s17 }
 0x240   : > { %733 = vrot.lane.b32.xlu1 %v2187_v15, %s2094_s17 }
 0x2a8   : > { %v529_v42 = vpop.xlane.xlu1 %528 }
 0x2a9   : > { %v539_v43 = vsub.f32 %v470_v24, %v529_v42 }
 0x2ab   : > { %v543_v48 = vmul.f32 1.442695, %v539_v43 }
 0x2ac   : > { %v532_v44 = vpop.xlane.xlu1 %531  ;;  %v535_v45 = vpop.xlane.xlu0 %534 }
 0x2ad   : > { %v541_v46 = vsub.f32 %v520_v32, %v535_v45  ;;  %v540_v52 = vsub.f32 %v473_v31, %v532_v44  ;;  %v1799_v31 = vld [vmem:[%s2402_s3 + $0x18] sm:$0xff]  }
 0x2ae   : > { %v1779_v36 = vunpack.c.l.bf16 %v1799_v31  ;;  %v1780_v44 = vunpack.c.h.bf16 %v1799_v31 }
 0x2af   : > { %v547_v47 = vmul.f32 1.442695, %v541_v46  ;;  %v545_v55 = vmul.f32 1.442695, %v540_v52 }
 0x2b0   : > { %v621_v49 = vpop.permute.xlu0 %620  ;;  %v538_v50 = vpop.xlane.xlu1 %537 }
 0x2b1   : > { %v542_v51 = vsub.f32 %v523_v39, %v538_v50  ;;  %1871 = vmatpush3.bf16.msra.mxu0 %v621_v49  ;;  %2002 = vpow2.f32 %v547_v47 }
 0x2b2   : > { %1882 = vmatprep.subr.bf16.mxu0 %v2090_v4  ;;  %2004 = vpow2.f32 %v543_v48 }
 0x2b3   : > { %v549_v53 = vmul.f32 1.442695, %v542_v51 }
 0x2b4   : > { %v574_v54 = vpop.permute.xlu1 %573 }
 0x2b5   : > { %1865 = vmatpush3.bf16.msra.mxu1 %v574_v54  ;;  %2006 = vpow2.f32 %v549_v53 }
 0x2b6   : > { %1876 = vmatprep.subr.bf16.mxu1 %v2090_v4  ;;  %2008 = vpow2.f32 %v545_v55 }
 0x2b8   : > { %v683_v0 = vpop.permute.xlu1 %682 }
 0x2b9   : > { %v688_v21 = vsel %vm428_vm2, %v683_v0, 0 }
 0x2bc   : > { %v734_v1 = vpop.permute.xlu1 %733 }
 0x2bd   : > { %v739_v16 = vsel %vm428_vm2, %v734_v1, 0 }
 0x2be   : > { %v2003_v56 = vpop.eup %2002 }
 0x2bf   : > { %v557_v57 = vsel %vm526_vm3, %v2003_v56, 0.0  ;;  %v2005_v58 = vpop.eup %2004 }
 0x2c0   : > { %558 = vadd.xlane.f32.xlu1 %v557_v57  ;;  %v551_v59 = vsel %vm526_vm3, %v2005_v58, 0.0 }
 0x2c2   : > { %v2007_v60 = vpop.eup %2006 }
 0x2c3   : > { %v560_v61 = vsel %vm526_vm3, %v2007_v60, 0.0  ;;  %v2009_v62 = vpop.eup %2008 }
 0x2c4   : > { %552 = vadd.xlane.f32.xlu1 %v551_v59  ;;  %v554_v63 = vsel %vm526_vm3, %v2009_v62, 0.0 }
 0x2c8   : > { %561 = vadd.xlane.f32.xlu1 %v560_v61 }
 0x2cc   : > { %555 = vadd.xlane.f32.xlu1 %v554_v63 }
 0x2dd   : > { %680 = vrot.lane.b32.xlu1 %v2184_v13, %s2095_s18 }
 0x2e1   : > { %731 = vrot.lane.b32.xlu1 %v2187_v15, %s2095_s18  ;;  %s2102_s18 = smov 40  }
 0x349   : > { %v559_v2 = vpop.xlane.xlu1 %558 }
 0x34a   : > { %2010 = vrcp.f32 %v559_v2 }
 0x34d   : > { %v553_v3 = vpop.xlane.xlu1 %552 }
 0x351   : > { %v562_v5 = vpop.xlane.xlu1 %561 }
 0x352   : > { %2012 = vrcp.f32 %v562_v5 }
 0x353   : > { %2014 = vrcp.f32 %v553_v3 }
 0x355   : > { %v556_v6 = vpop.xlane.xlu1 %555 }
 0x356   : > { %2016 = vrcp.f32 %v556_v6 }
 0x357   : > { %v2011_v7 = vpop.eup %2010 }
 0x358   : > { %v568_v9 = vmul.f32 %v2011_v7, %v2003_v56 }
 0x359   : > { %v681_v19 = vpop.permute.xlu1 %680 }
 0x35d   : > { %v732_v22 = vpop.permute.xlu1 %731 }
 0x35f   : > { %v2013_v8 = vpop.eup %2012 }
 0x360   : > { %v570_v10 = vmul.f32 %v2013_v8, %v2007_v60  ;;  %v2015_v11 = vpop.eup %2014 }
 0x361   : > { %v564_v17 = vmul.f32 %v2015_v11, %v2005_v58 }
 0x362   : > { %v572_v12 = vpack.c.bf16 %v570_v10, %v568_v9 }
 0x363   : > { %v2017_v14 = vpop.eup %2016 }
 0x364   : > { %1873 = vmatmul.mubr.msk.bf16.vlgmr.msra.gmra.mxu0 %vm526_vm3, %v572_v12  ;;  %v566_v18 = vmul.f32 %v2017_v14, %v2009_v62 }
 0x365   : > { %1883 = vmatpush3.bf16.xpose.msra.mxu0 %v739_v16  ;;  %1884 = vmatprep.mubr.msk.bf16.mxu0 %vm2091_vm1, %v2090_v4 }
 0x366   : > { %v571_v20 = vpack.c.bf16 %v566_v18, %v564_v17  ;;  %1894 = vmatprep.subr.bf16.mxu0 %v2090_v4 }
 0x368   : > { %1867 = vmatmul.mubr.msk.bf16.vlgmr.msra.gmra.mxu1 %vm526_vm3, %v571_v20 }
 0x369   : > { %1877 = vmatpush3.bf16.xpose.msra.mxu1 %v688_v21  ;;  %1878 = vmatprep.mubr.msk.bf16.mxu1 %vm2091_vm1, %v2090_v4 }
 0x36a   : > { %1888 = vmatprep.subr.bf16.mxu1 %v2090_v4 }
 0x36c   : > { %1885 = vmatmul.mubr.msk.bf16.vlgmr.msra.gmra.mxu0 %vm428_vm2, %v732_v22 }
 0x36d   : > { %1896 = vmatprep.mubr.msk.bf16.mxu0 %vm2091_vm1, %v2090_v4 }
 0x370   : > { %1879 = vmatmul.mubr.msk.bf16.vlgmr.msra.gmra.mxu1 %vm428_vm2, %v681_v19 }
 0x371   : > { %1890 = vmatprep.mubr.msk.bf16.mxu1 %vm2091_vm1, %v2090_v4 }
 0x424   : > { %v660_v23 = vpop.f32.mrf.mxu0 }
 0x425   : > { %669 = vst.msk [vmem:[#allocation2 + $0x10] sm:$0xff] %vm428_vm2, %v660_v23 }
 0x426   : > { %v1874_v24 = vpop.f32.mrf.mxu0 }
 0x428   : > { %v613_v25 = vpop.f32.mrf.mxu1  ;;  %v663_v26 = vpop.f32.mrf.mxu0 }
 0x429   : > { %667 = vst.msk [vmem:[#allocation2] sm:$0xff] %vm428_vm2, %v613_v25  ;;  %670 = vst.msk [vmem:[#allocation2 + $0x18] sm:$0xff] %vm428_vm2, %v663_v26 }
 0x42a   : > { %v1868_v27 = vpop.f32.mrf.mxu1  ;;  %v1875_v28 = vpop.f32.mrf.mxu0 }
 0x42c   : > { %v616_v30 = vpop.f32.mrf.mxu1  ;;  %v775_v32 = vpop.f32.mrf.mxu0 }
 0x42d   : > { %668 = vst.msk [vmem:[#allocation2 + $0x8] sm:$0xff] %vm428_vm2, %v616_v30  ;;  %v776_v43 = vadd.f32 %v1779_v36, %v775_v32 }
 0x42e   : > { %v1869_v34 = vpop.f32.mrf.mxu1  ;;  %v1886_v35 = vpop.f32.mrf.mxu0 }
 0x42f   : > { %v788_v51 = vsel %vm526_vm3, %v776_v43, -inf }
 0x430   : > { %v724_v37 = vpop.f32.mrf.mxu1  ;;  %v778_v38 = vpop.f32.mrf.mxu0 }
 0x431   : > { %v725_v39 = vadd.f32 %v1775_v33, %v724_v37  ;;  %v779_v49 = vadd.f32 %v1780_v44, %v778_v38 }
 0x432   : > { %v1880_v41 = vpop.f32.mrf.mxu1  ;;  %v1887_v42 = vpop.f32.mrf.mxu0 }
 0x433   : > { %v782_v45 = vsel %vm526_vm3, %v725_v39, -inf  ;;  %v791_v52 = vsel %vm526_vm3, %v779_v49, -inf  ;;  %v1801_v42 = vld [vmem:[%s2402_s3 + $0x28] sm:$0xff]  }
 0x434   : > { %783 = vmax.xlane.f32.xlu0 %v782_v45  ;;  %v727_v46 = vpop.f32.mrf.mxu1 }
 0x435   : > { %v728_v47 = vadd.f32 %v1776_v40, %v727_v46  ;;  %v1800_v40 = vld [vmem:[%s2402_s3 + $0x20] sm:$0xff]  }
 0x436   : > { %v1881_v48 = vpop.f32.mrf.mxu1  ;;  %v1783_v44 = vunpack.c.l.bf16 %v1800_v40 }
 0x437   : > { %v785_v50 = vsel %vm526_vm3, %v728_v47, -inf }
 0x438   : > { %786 = vmax.xlane.f32.xlu1 %v785_v50  ;;  %789 = vmax.xlane.f32.xlu0 %v788_v51  ;;  %v1784_v51 = vunpack.c.h.bf16 %v1800_v40 }
 0x43c   : > { %792 = vmax.xlane.f32.xlu0 %v791_v52 }
 0x449   : > { %828 = vrot.lane.b32.xlu1 %v2184_v13, %s2096_s27 }
 0x4bd   : > { %v784_v53 = vpop.xlane.xlu0 %783 }
 0x4be   : > { %v794_v54 = vsub.f32 %v725_v39, %v784_v53 }
 0x4c0   : > { %v798_v60 = vmul.f32 1.442695, %v794_v54 }
 0x4c1   : > { %v787_v55 = vpop.xlane.xlu1 %786  ;;  %v790_v56 = vpop.xlane.xlu0 %789 }
 0x4c2   : > { %v796_v57 = vsub.f32 %v776_v43, %v790_v56  ;;  %v795_v58 = vsub.f32 %v728_v47, %v787_v55  ;;  %v1787_v47 = vunpack.c.l.bf16 %v1801_v42  ;;  %v1788_v55 = vunpack.c.h.bf16 %v1801_v42 }
 0x4c4   : > { %v802_v59 = vmul.f32 1.442695, %v796_v57  ;;  %v800_v0 = vmul.f32 1.442695, %v795_v58 }
 0x4c5   : > { %v829_v61 = vpop.permute.xlu1 %828  ;;  %v793_v62 = vpop.xlane.xlu0 %792 }
 0x4c6   : > { %v797_v63 = vsub.f32 %v779_v49, %v793_v62  ;;  %1889 = vmatpush3.bf16.msra.mxu1 %v829_v61  ;;  %2018 = vpow2.f32 %v802_v59 }
 0x4c7   : > { %1900 = vmatprep.subr.bf16.mxu1 %v2090_v4  ;;  %2020 = vpow2.f32 %v798_v60 }
 0x4c8   : > { %v804_v1 = vmul.f32 1.442695, %v797_v63 }
 0x4ca   : > { %2022 = vpow2.f32 %v804_v1 }
 0x4cb   : > { %2024 = vpow2.f32 %v800_v0 }
 0x4d3   : > { %v2019_v2 = vpop.eup %2018 }
 0x4d4   : > { %v812_v3 = vsel %vm526_vm3, %v2019_v2, 0.0  ;;  %v2021_v5 = vpop.eup %2020 }
 0x4d5   : > { %813 = vadd.xlane.f32.xlu1 %v812_v3  ;;  %v806_v9 = vsel %vm526_vm3, %v2021_v5, 0.0 }
 0x4d7   : > { %v2023_v6 = vpop.eup %2022 }
 0x4d8   : > { %v815_v7 = vsel %vm526_vm3, %v2023_v6, 0.0  ;;  %v2025_v8 = vpop.eup %2024 }
 0x4d9   : > { %816 = vadd.xlane.f32.xlu0 %v815_v7  ;;  %807 = vadd.xlane.f32.xlu1 %v806_v9  ;;  %v809_v10 = vsel %vm526_vm3, %v2025_v8, 0.0 }
 0x4dd   : > { %810 = vadd.xlane.f32.xlu0 %v809_v10 }
 0x4ea   : > { %954 = vrot.lane.b32.xlu1 %v2184_v13, %s2097_s28 }
 0x4ee   : > { %1005 = vrot.lane.b32.xlu1 %v2187_v15, %s2097_s28 }
 0x4f2   : > { %1003 = vrot.lane.b32.xlu1 %v2187_v15, %s2098_s30 }
 0x4f3   : > { %875 = vrot.lane.b32.xlu0 %v2187_v15, %s2096_s27 }
 0x4f7   : > { %952 = vrot.lane.b32.xlu0 %v2184_v13, %s2098_s30  ;;  %s2105_s30 = smov 24  }
 0x55e   : > { %v814_v11 = vpop.xlane.xlu1 %813 }
 0x55f   : > { %2026 = vrcp.f32 %v814_v11 }
 0x562   : > { %v817_v12 = vpop.xlane.xlu0 %816  ;;  %v808_v14 = vpop.xlane.xlu1 %807 }
 0x563   : > { %2028 = vrcp.f32 %v817_v12 }
 0x564   : > { %2030 = vrcp.f32 %v808_v14 }
 0x566   : > { %v811_v16 = vpop.xlane.xlu0 %810  ;;  %v955_v18 = vpop.permute.xlu1 %954 }
 0x567   : > { %2032 = vrcp.f32 %v811_v16  ;;  %v960_v31 = vsel %vm428_vm2, %v955_v18, 0 }
 0x56a   : > { %v876_v17 = vpop.permute.xlu0 %875  ;;  %v1006_v24 = vpop.permute.xlu1 %1005 }
 0x56b   : > { %1895 = vmatpush3.bf16.msra.mxu0 %v876_v17  ;;  %v1011_v27 = vsel %vm428_vm2, %v1006_v24, 0 }
 0x56c   : > { %1906 = vmatprep.subr.bf16.mxu0 %v2090_v4  ;;  %v2027_v19 = vpop.eup %2026 }
 0x56d   : > { %v823_v21 = vmul.f32 %v2027_v19, %v2019_v2 }
 0x56e   : > { %v1004_v32 = vpop.permute.xlu1 %1003  ;;  %v953_v33 = vpop.permute.xlu0 %952 }
 0x570   : > { %v2029_v20 = vpop.eup %2028 }
 0x571   : > { %v825_v22 = vmul.f32 %v2029_v20, %v2023_v6  ;;  %v2031_v23 = vpop.eup %2030 }
 0x572   : > { %v819_v28 = vmul.f32 %v2031_v23, %v2021_v5 }
 0x573   : > { %v827_v25 = vpack.c.bf16 %v825_v22, %v823_v21 }
 0x574   : > { %v2033_v26 = vpop.eup %2032 }
 0x575   : > { %1897 = vmatmul.mubr.msk.bf16.vlgmr.msra.gmra.mxu0 %vm526_vm3, %v827_v25  ;;  %v821_v29 = vmul.f32 %v2033_v26, %v2025_v8 }
 0x576   : > { %1907 = vmatpush3.bf16.xpose.msra.mxu0 %v1011_v27  ;;  %1908 = vmatprep.mubr.msk.bf16.mxu0 %vm2091_vm1, %v2090_v4 }
 0x577   : > { %v826_v30 = vpack.c.bf16 %v821_v29, %v819_v28  ;;  %1918 = vmatprep.subr.bf16.mxu0 %v2090_v4 }
 0x579   : > { %1891 = vmatmul.mubr.msk.bf16.vlgmr.msra.gmra.mxu1 %vm526_vm3, %v826_v30 }
 0x57a   : > { %1901 = vmatpush3.bf16.xpose.msra.mxu1 %v960_v31  ;;  %1902 = vmatprep.mubr.msk.bf16.mxu1 %vm2091_vm1, %v2090_v4 }
 0x57b   : > { %1912 = vmatprep.subr.bf16.mxu1 %v2090_v4 }
 0x57d   : > { %1909 = vmatmul.mubr.msk.bf16.vlgmr.msra.gmra.mxu0 %vm428_vm2, %v1004_v32 }
 0x57e   : > { %1920 = vmatprep.mubr.msk.bf16.mxu0 %vm2091_vm1, %v2090_v4 }
 0x581   : > { %1903 = vmatmul.mubr.msk.bf16.vlgmr.msra.gmra.mxu1 %vm428_vm2, %v953_v33 }
 0x582   : > { %1914 = vmatprep.mubr.msk.bf16.mxu1 %vm2091_vm1, %v2090_v4 }
 0x635   : > { %v2284_v34 = vpop.f32.mrf.mxu0 }
 0x637   : > { %v1898_v35 = vpop.f32.mrf.mxu0 }
 0x639   : > { %v2286_v36 = vpop.f32.mrf.mxu1  ;;  %v2288_v37 = vpop.f32.mrf.mxu0 }
 0x63b   : > { %v1892_v38 = vpop.f32.mrf.mxu1  ;;  %v1899_v39 = vpop.f32.mrf.mxu0 }
 0x63d   : > { %v2293_v41 = vpop.f32.mrf.mxu1  ;;  %v1047_v43 = vpop.f32.mrf.mxu0 }
 0x63e   : > { %v1048_v54 = vadd.f32 %v1787_v47, %v1047_v43 }
 0x63f   : > { %v1893_v45 = vpop.f32.mrf.mxu1  ;;  %v1910_v46 = vpop.f32.mrf.mxu0 }
 0x640   : > { %v1060_v62 = vsel %vm526_vm3, %v1048_v54, -inf }
 0x641   : > { %v996_v48 = vpop.f32.mrf.mxu1  ;;  %v1050_v49 = vpop.f32.mrf.mxu0 }
 0x642   : > { %v997_v50 = vadd.f32 %v1783_v44, %v996_v48  ;;  %v1051_v60 = vadd.f32 %v1788_v55, %v1050_v49  ;;  %v1802_v55 = vld [vmem:[%s2402_s3 + $0x30] sm:$0xff]  }
 0x643   : > { %v1904_v52 = vpop.f32.mrf.mxu1  ;;  %v1911_v53 = vpop.f32.mrf.mxu0 }
 0x644   : > { %v1054_v56 = vsel %vm526_vm3, %v997_v50, -inf  ;;  %v1063_v63 = vsel %vm526_vm3, %v1051_v60, -inf }
 0x645   : > { %1055 = vmax.xlane.f32.xlu0 %v1054_v56  ;;  %v999_v57 = vpop.f32.mrf.mxu1 }
 0x646   : > { %v1000_v58 = vadd.f32 %v1784_v51, %v999_v57  ;;  %v1803_v57 = vld [vmem:[%s2402_s3 + $0x38] sm:$0xff]  }
 0x647   : > { %v1905_v59 = vpop.f32.mrf.mxu1 }
 0x648   : > { %v1057_v61 = vsel %vm526_vm3, %v1000_v58, -inf }
 0x649   : > { %1058 = vmax.xlane.f32.xlu1 %v1057_v61  ;;  %1061 = vmax.xlane.f32.xlu0 %v1060_v62  ;;  %v1795_v61 = vunpack.c.l.bf16 %v1803_v57 }
 0x64d   : > { %1064 = vmax.xlane.f32.xlu0 %v1063_v63 }
 0x65a   : > { %1100 = vrot.lane.b32.xlu1 %v2184_v13, %s2099_s11 }
 0x6ce   : > { %v1056_v0 = vpop.xlane.xlu0 %1055 }
 0x6cf   : > { %v1066_v1 = vsub.f32 %v997_v50, %v1056_v0 }
 0x6d1   : > { %v1070_v8 = vmul.f32 1.442695, %v1066_v1  ;;  %v1792_v1 = vunpack.c.h.bf16 %v1802_v55 }
 0x6d2   : > { %v1059_v2 = vpop.xlane.xlu1 %1058  ;;  %v1062_v3 = vpop.xlane.xlu0 %1061 }
 0x6d3   : > { %v1068_v5 = vsub.f32 %v1048_v54, %v1062_v3  ;;  %v1067_v6 = vsub.f32 %v1000_v58, %v1059_v2  ;;  %v1791_v58 = vunpack.c.l.bf16 %v1802_v55 }
 0x6d5   : > { %v1074_v7 = vmul.f32 1.442695, %v1068_v5  ;;  %v1072_v12 = vmul.f32 1.442695, %v1067_v6  ;;  %v1796_v6 = vunpack.c.h.bf16 %v1803_v57 }
 0x6d6   : > { %v1101_v9 = vpop.permute.xlu1 %1100  ;;  %v1065_v10 = vpop.xlane.xlu0 %1064 }
 0x6d7   : > { %v1069_v11 = vsub.f32 %v1051_v60, %v1065_v10  ;;  %1913 = vmatpush3.bf16.msra.mxu1 %v1101_v9  ;;  %2034 = vpow2.f32 %v1074_v7 }
 0x6d8   : > { %1924 = vmatprep.subr.bf16.mxu1 %v2090_v4  ;;  %2036 = vpow2.f32 %v1070_v8 }
 0x6d9   : > { %v1076_v14 = vmul.f32 1.442695, %v1069_v11 }
 0x6db   : > { %2038 = vpow2.f32 %v1076_v14 }
 0x6dc   : > { %2040 = vpow2.f32 %v1072_v12 }
 0x6e4   : > { %v2035_v16 = vpop.eup %2034 }
 0x6e5   : > { %v1084_v17 = vsel %vm526_vm3, %v2035_v16, 0.0  ;;  %v2037_v18 = vpop.eup %2036 }
 0x6e6   : > { %1085 = vadd.xlane.f32.xlu1 %v1084_v17  ;;  %v1078_v22 = vsel %vm526_vm3, %v2037_v18, 0.0 }
 0x6e8   : > { %v2039_v19 = vpop.eup %2038 }
 0x6e9   : > { %v1087_v20 = vsel %vm526_vm3, %v2039_v19, 0.0  ;;  %v2041_v21 = vpop.eup %2040 }
 0x6ea   : > { %1088 = vadd.xlane.f32.xlu0 %v1087_v20  ;;  %1079 = vadd.xlane.f32.xlu1 %v1078_v22  ;;  %v1081_v23 = vsel %vm526_vm3, %v2041_v21, 0.0 }
 0x6ee   : > { %1082 = vadd.xlane.f32.xlu0 %v1081_v23 }
 0x6fb   : > { %1226 = vrot.lane.b32.xlu1 %v2184_v13, %s2100_s12 }
 0x6ff   : > { %1277 = vrot.lane.b32.xlu1 %v2187_v15, %s2100_s12 }
 0x703   : > { %1275 = vrot.lane.b32.xlu1 %v2187_v15, %s2101_s13 }
 0x704   : > { %1147 = vrot.lane.b32.xlu0 %v2187_v15, %s2099_s11  ;;  %s319_s11 = scalar_lea.vmem %s2405_s6, %s1759_s29 }
 0x708   : > { %1224 = vrot.lane.b32.xlu0 %v2184_v13, %s2101_s13 }
 0x76f   : > { %v1086_v24 = vpop.xlane.xlu1 %1085 }
 0x770   : > { %2042 = vrcp.f32 %v1086_v24 }
 0x773   : > { %v1089_v25 = vpop.xlane.xlu0 %1088  ;;  %v1080_v26 = vpop.xlane.xlu1 %1079 }
 0x774   : > { %2044 = vrcp.f32 %v1089_v25 }
 0x775   : > { %2046 = vrcp.f32 %v1080_v26 }
 0x777   : > { %v1083_v27 = vpop.xlane.xlu0 %1082  ;;  %v1227_v29 = vpop.permute.xlu1 %1226 }
 0x778   : > { %2048 = vrcp.f32 %v1083_v27  ;;  %v1232_v46 = vsel %vm428_vm2, %v1227_v29, 0 }
 0x77b   : > { %v1148_v28 = vpop.permute.xlu0 %1147  ;;  %v1278_v38 = vpop.permute.xlu1 %1277 }
 0x77c   : > { %1919 = vmatpush3.bf16.msra.mxu0 %v1148_v28  ;;  %v1283_v42 = vsel %vm428_vm2, %v1278_v38, 0 }
 0x77d   : > { %1930 = vmatprep.subr.bf16.mxu0 %v2090_v4  ;;  %v2043_v30 = vpop.eup %2042 }
 0x77e   : > { %v1095_v32 = vmul.f32 %v2043_v30, %v2035_v16 }
 0x77f   : > { %v1276_v47 = vpop.permute.xlu1 %1275  ;;  %v1225_v48 = vpop.permute.xlu0 %1224 }
 0x781   : > { %v2045_v31 = vpop.eup %2044 }
 0x782   : > { %v1097_v33 = vmul.f32 %v2045_v31, %v2039_v19  ;;  %v2047_v35 = vpop.eup %2046 }
 0x783   : > { %v1091_v43 = vmul.f32 %v2047_v35, %v2037_v18 }
 0x784   : > { %v1099_v39 = vpack.c.bf16 %v1097_v33, %v1095_v32 }
 0x785   : > { %v2049_v40 = vpop.eup %2048 }
 0x786   : > { %1921 = vmatmul.mubr.msk.bf16.vlgmr.msra.gmra.mxu0 %vm526_vm3, %v1099_v39  ;;  %v1093_v44 = vmul.f32 %v2049_v40, %v2041_v21 }
 0x787   : > { %1931 = vmatpush3.bf16.xpose.msra.mxu0 %v1283_v42  ;;  %1932 = vmatprep.mubr.msk.bf16.mxu0 %vm2091_vm1, %v2090_v4 }
 0x788   : > { %v1098_v45 = vpack.c.bf16 %v1093_v44, %v1091_v43  ;;  %1942 = vmatprep.subr.bf16.mxu0 %v2090_v4 }
 0x78a   : > { %1915 = vmatmul.mubr.msk.bf16.vlgmr.msra.gmra.mxu1 %vm526_vm3, %v1098_v45 }
 0x78b   : > { %1925 = vmatpush3.bf16.xpose.msra.mxu1 %v1232_v46  ;;  %1926 = vmatprep.mubr.msk.bf16.mxu1 %vm2091_vm1, %v2090_v4 }
 0x78c   : > { %1936 = vmatprep.subr.bf16.mxu1 %v2090_v4 }
 0x78e   : > { %1933 = vmatmul.mubr.msk.bf16.vlgmr.msra.gmra.mxu0 %vm428_vm2, %v1276_v47 }
 0x78f   : > { %1944 = vmatprep.mubr.msk.bf16.mxu0 %vm2091_vm1, %v2090_v4 }
 0x792   : > { %1927 = vmatmul.mubr.msk.bf16.vlgmr.msra.gmra.mxu1 %vm428_vm2, %v1225_v48 }
 0x793   : > { %1938 = vmatprep.mubr.msk.bf16.mxu1 %vm2091_vm1, %v2090_v4 }
 0x846   : > { %v2332_v49 = vpop.f32.mrf.mxu0 }
 0x848   : > { %v1922_v50 = vpop.f32.mrf.mxu0 }
 0x84a   : > { %v2334_v51 = vpop.f32.mrf.mxu1  ;;  %v2336_v52 = vpop.f32.mrf.mxu0 }
 0x84c   : > { %v1916_v53 = vpop.f32.mrf.mxu1  ;;  %v1923_v54 = vpop.f32.mrf.mxu0 }
 0x84e   : > { %v2341_v56 = vpop.f32.mrf.mxu1  ;;  %v1319_v4 = vpop.f32.mrf.mxu0 }
 0x84f   : > { %v1320_v5 = vadd.f32 %v1795_v61, %v1319_v4 }
 0x850   : > { %v1917_v59 = vpop.f32.mrf.mxu1  ;;  %v1934_v60 = vpop.f32.mrf.mxu0 }
 0x851   : > { %v1332_v14 = vsel %vm526_vm3, %v1320_v5, -inf  ;;  %v2000_v59 = vld [vmem:[%s2403_s4 + $0x8] sm:$0xff]   ;;  %v2001_v60 = vld [vmem:[%s2403_s4] sm:$0xff]  }
 0x852   : > { %v1268_v62 = vpop.f32.mrf.mxu1  ;;  %v1322_v63 = vpop.f32.mrf.mxu0 }
 0x853   : > { %v1269_v0 = vadd.f32 %v1791_v58, %v1268_v62  ;;  %v1323_v11 = vadd.f32 %v1796_v6, %v1322_v63 }
 0x854   : > { %v1928_v2 = vpop.f32.mrf.mxu1  ;;  %v1935_v3 = vpop.f32.mrf.mxu0 }
 0x855   : > { %v1326_v7 = vsel %vm526_vm3, %v1269_v0, -inf  ;;  %v1335_v16 = vsel %vm526_vm3, %v1323_v11, -inf }
 0x856   : > { %1327 = vmax.xlane.f32.xlu0 %v1326_v7  ;;  %v1271_v8 = vpop.f32.mrf.mxu1 }
 0x857   : > { %v1272_v9 = vadd.f32 %v1792_v1, %v1271_v8 }
 0x858   : > { %v1929_v10 = vpop.f32.mrf.mxu1 }
 0x859   : > { %v1329_v12 = vsel %vm526_vm3, %v1272_v9, -inf }
 0x85a   : > { %1330 = vmax.xlane.f32.xlu1 %v1329_v12  ;;  %1333 = vmax.xlane.f32.xlu0 %v1332_v14 }
 0x85e   : > { %1336 = vmax.xlane.f32.xlu0 %v1335_v16 }
 0x8df   : > { %v1328_v17 = vpop.xlane.xlu0 %1327 }
 0x8e0   : > { %v1338_v18 = vsub.f32 %v1269_v0, %v1328_v17  ;;  %v1748_v17 = vld [vmem:[%s2404_s5] ss:$0 sm:$0xff] }
 0x8e2   : > { %v1342_v24 = vmul.f32 1.442695, %v1338_v18 }
 0x8e3   : > { %v1331_v19 = vpop.xlane.xlu1 %1330  ;;  %v1334_v20 = vpop.xlane.xlu0 %1333 }
 0x8e4   : > { %v1340_v21 = vsub.f32 %v1320_v5, %v1334_v20  ;;  %v1339_v22 = vsub.f32 %v1272_v9, %v1331_v19 }
 0x8e6   : > { %v1346_v23 = vmul.f32 1.442695, %v1340_v21  ;;  %v1344_v27 = vmul.f32 1.442695, %v1339_v22 }
 0x8e7   : > { %v1337_v25 = vpop.xlane.xlu0 %1336 }
 0x8e8   : > { %v1341_v26 = vsub.f32 %v1323_v11, %v1337_v25  ;;  %2050 = vpow2.f32 %v1346_v23 }
 0x8e9   : > { %2052 = vpow2.f32 %v1342_v24 }
 0x8ea   : > { %v1348_v28 = vmul.f32 1.442695, %v1341_v26 }
 0x8ec   : > { %2054 = vpow2.f32 %v1348_v28 }
 0x8ed   : > { %2056 = vpow2.f32 %v1344_v27 }
 0x8f5   : > { %v2051_v29 = vpop.eup %2050 }
 0x8f6   : > { %v1356_v30 = vsel %vm526_vm3, %v2051_v29, 0.0  ;;  %v2053_v31 = vpop.eup %2052 }
 0x8f7   : > { %1357 = vadd.xlane.f32.xlu1 %v1356_v30  ;;  %v1350_v38 = vsel %vm526_vm3, %v2053_v31, 0.0 }
 0x8f9   : > { %v2055_v32 = vpop.eup %2054 }
 0x8fa   : > { %v1359_v33 = vsel %vm526_vm3, %v2055_v32, 0.0  ;;  %v2057_v35 = vpop.eup %2056 }
 0x8fb   : > { %1360 = vadd.xlane.f32.xlu0 %v1359_v33  ;;  %1351 = vadd.xlane.f32.xlu1 %v1350_v38  ;;  %v1353_v39 = vsel %vm526_vm3, %v2057_v35, 0.0 }
 0x8ff   : > { %1354 = vadd.xlane.f32.xlu0 %v1353_v39 }
 0x90c   : > { %1372 = vrot.lane.b32.xlu1 %v2184_v13, %s2102_s18 }
 0x910   : > { %926 = vrot.lane.b32.xlu1 %v2286_v36, %s2103_s19 }
 0x914   : > { %928 = vrot.lane.b32.xlu1 %v2293_v41, %s2103_s19 }
 0x915   : > { %1419 = vrot.lane.b32.xlu0 %v2187_v15, %s2102_s18 }
 0x918   : > { %932 = vrot.lane.b32.xlu1 %v2288_v37, %s2103_s19 }
 0x919   : > { %930 = vrot.lane.b32.xlu0 %v2284_v34, %s2103_s19 }
 0x91c   : > { %1200 = vrot.lane.b32.xlu1 %v2341_v56, %s2104_s20 }
 0x91d   : > { %1198 = vrot.lane.b32.xlu0 %v2334_v51, %s2104_s20 }
 0x920   : > { %1204 = vrot.lane.b32.xlu1 %v2336_v52, %s2104_s20 }
 0x921   : > { %1202 = vrot.lane.b32.xlu0 %v2332_v49, %s2104_s20 }
 0x980   : > { %v1358_v13 = vpop.xlane.xlu1 %1357 }
 0x981   : > { %2058 = vrcp.f32 %v1358_v13 }
 0x984   : > { %v1361_v36 = vpop.xlane.xlu0 %1360  ;;  %v1352_v40 = vpop.xlane.xlu1 %1351 }
 0x985   : > { %2060 = vrcp.f32 %v1361_v36 }
 0x986   : > { %2062 = vrcp.f32 %v1352_v40 }
 0x988   : > { %v1355_v15 = vpop.xlane.xlu0 %1354  ;;  %v1373_v41 = vpop.permute.xlu1 %1372 }
 0x989   : > { %2064 = vrcp.f32 %v1355_v15  ;;  %1937 = vmatpush3.bf16.msra.mxu1 %v1373_v41 }
 0x98a   : > { %1948 = vmatprep.subr.bf16.mxu1 %v2000_v59 }
 0x98c   : > { %v1420_v34 = vpop.permute.xlu0 %1419  ;;  %v927_v37 = vpop.permute.xlu1 %926 }
 0x98d   : > { %1943 = vmatpush3.bf16.msra.mxu0 %v1420_v34  ;;  %939 = vst.msk [vmem:[#allocation2] sm:$0xff] %vm938_vm4, %v927_v37 }
 0x98e   : > { %v2059_v42 = vpop.eup %2058 }
 0x98f   : > { %v1367_v46 = vmul.f32 %v2059_v42, %v2051_v29 }
 0x990   : > { %v931_v43 = vpop.permute.xlu0 %930  ;;  %v929_v44 = vpop.permute.xlu1 %928 }
 0x991   : > { %941 = vst.msk [vmem:[#allocation2 + $0x10] sm:$0xff] %vm938_vm4, %v931_v43  ;;  %940 = vst.msk [vmem:[#allocation2 + $0x8] sm:$0xff] %vm938_vm4, %v929_v44 }
 0x992   : > { %v2061_v45 = vpop.eup %2060 }
 0x993   : > { %v1369_v47 = vmul.f32 %v2061_v45, %v2055_v32  ;;  %v2063_v48 = vpop.eup %2062 }
 0x994   : > { %v1199_v49 = vpop.permute.xlu0 %1198  ;;  %v933_v50 = vpop.permute.xlu1 %932  ;;  %v1363_v53 = vmul.f32 %v2063_v48, %v2053_v31 }
 0x995   : > { %1211 = vst.msk [vmem:[#allocation2] sm:$0xff] %vm1210_vm5, %v1199_v49  ;;  %v1371_v51 = vpack.c.bf16 %v1369_v47, %v1367_v46 }
 0x996   : > { %v2065_v52 = vpop.eup %2064  ;;  %942 = vst.msk [vmem:[#allocation2 + $0x18] sm:$0xff] %vm938_vm4, %v933_v50 }
 0x997   : > { %1945 = vmatmul.mubr.msk.bf16.vlgmr.msra.gmra.mxu0 %vm526_vm3, %v1371_v51  ;;  %v1365_v54 = vmul.f32 %v2065_v52, %v2057_v35 }
 0x998   : > { %v1203_v55 = vpop.permute.xlu0 %1202  ;;  %v1201_v56 = vpop.permute.xlu1 %1200 }
 0x999   : > { %1213 = vst.msk [vmem:[#allocation2 + $0x10] sm:$0xff] %vm1210_vm5, %v1203_v55  ;;  %v1370_v57 = vpack.c.bf16 %v1365_v54, %v1363_v53  ;;  %1212 = vst.msk [vmem:[#allocation2 + $0x8] sm:$0xff] %vm1210_vm5, %v1201_v56 }
 0x99b   : > { %1939 = vmatmul.mubr.msk.bf16.vlgmr.msra.gmra.mxu1 %vm526_vm3, %v1370_v57 }
 0x99c   : > { %v1205_v4 = vpop.permute.xlu1 %1204  ;;  %1949 = vmatpush3.bf16.msra.mxu1 %v2000_v59 }
 0x99d   : > { %1214 = vst.msk [vmem:[#allocation2 + $0x18] sm:$0xff] %vm1210_vm5, %v1205_v4  ;;  %1950 = vmatprep.subr.bf16.mxu1 %v2001_v60 }
 0x9a0   : > { %1951 = vmatpush3.bf16.msra.mxu1 %v2001_v60 }
 0xa57   : > { %v1459_v58 = vpop.f32.mrf.mxu0 }
 0xa59   : > { %v1946_v61 = vpop.f32.mrf.mxu0 }
 0xa5b   : > { %v1412_v62 = vpop.f32.mrf.mxu1  ;;  %v1462_v63 = vpop.f32.mrf.mxu0 }
 0xa5c   : > { %1470 = vrot.lane.b32.xlu0 %v1412_v62, %s2105_s30 }
 0xa5d   : > { %v1940_v0 = vpop.f32.mrf.mxu1  ;;  %v1947_v1 = vpop.f32.mrf.mxu0 }
 0xa5f   : > { %v1415_v2 = vpop.f32.mrf.mxu1 }
 0xa60   : > { %1472 = vrot.lane.b32.xlu1 %v1415_v2, %s2105_s30  ;;  %1474 = vrot.lane.b32.xlu0 %v1459_v58, %s2105_s30 }
 0xa61   : > { %v1941_v3 = vpop.f32.mrf.mxu1 }
 0xa64   : > { %1476 = vrot.lane.b32.xlu1 %v1462_v63, %s2105_s30 }
 0xace   : > { %v1471_v5 = vpop.permute.xlu0 %1470 }
 0xacf   : > { %1483 = vst.msk [vmem:[#allocation2] sm:$0xff] %vm1482_vm6, %v1471_v5 }
 0xad2   : > { %v1473_v6 = vpop.permute.xlu1 %1472  ;;  %v1475_v7 = vpop.permute.xlu0 %1474 }
 0xad3   : > { %1484 = vst.msk [vmem:[#allocation2 + $0x8] sm:$0xff] %vm1482_vm6, %v1473_v6  ;;  %1485 = vst.msk [vmem:[#allocation2 + $0x10] sm:$0xff] %vm1482_vm6, %v1475_v7 }
 0xad6   : > { %v1477_v8 = vpop.permute.xlu1 %1476  ;;  %v1487_v9 = vld [vmem:[#allocation2] sm:$0xff] }
 0xad7   : > { %1486 = vst.msk [vmem:[#allocation2 + $0x18] sm:$0xff] %vm1482_vm6, %v1477_v8 }
 0xada   : > { %v1488_v10 = vld [vmem:[#allocation2 + $0x8] sm:$0xff]  ;;  %v1489_v12 = vld [vmem:[#allocation2 + $0x10] sm:$0xff] }
 0xadb   : > { %v1491_v11 = vpack.c.bf16 %v1488_v10, %v1487_v9 }
 0xadd   : > { %1952 = vmatprep.mubr.msk.bf16.mxu1 %vm359_vm0, %v1491_v11 }
 0xade   : > { %v1490_v14 = vld [vmem:[#allocation2 + $0x18] sm:$0xff] }
 0xadf   : > { %v1492_v16 = vpack.c.bf16 %v1490_v14, %v1489_v12 }
 0xae1   : > { %1953 = vmatmul.mubr.msk.bf16.vlgmr.msra.gmra.mxu1 %vm359_vm0, %v1492_v16 }
 0xba1   : > { %v1954_v18 = vpop.f32.mrf.mxu1 }
 0xba2   : > { %v1565_v19 = vadd.f32 %v1954_v18, %v1748_v17 }
 0xba3   : > { %v1556_v20 = vpop.f32.mrf.mxu1 }
 0xba4   : > { %v1763_v21 = vpack.c.bf16 %v1565_v19, %v1565_v19  ;;  %v1557_v22 = vadd.f32 %v1748_v17, %v1556_v20 }
 0xba5   : > { %v1955_v23 = vpop.f32.mrf.mxu1 }
 0xba6   : > { %1590 = vst.msk [vmem:[%s319_s11 + $0x8] sm:$0xf] %vm1587_vm7, %v1763_v21  ;;  %v1761_v24 = vpack.c.bf16 %v1557_v22, %v1557_v22  ;;  %v1568_v25 = vadd.f32 %v1955_v23, %v1748_v17 }
 0xba7   : > { %v1559_v26 = vpop.f32.mrf.mxu1 }
 0xba8   : > { %1588 = vst.msk [vmem:[%s319_s11] sm:$0xf] %vm1587_vm7, %v1761_v24  ;;  %v1764_v27 = vpack.c.bf16 %v1568_v25, %v1568_v25  ;;  %v1560_v28 = vadd.f32 %v1748_v17, %v1559_v26 }
 0xbaa   : > { %1591 = vst.msk [vmem:[%s319_s11 + $0xc] sm:$0xf] %vm1587_vm7, %v1764_v27  ;;  %v1762_v29 = vpack.c.bf16 %v1560_v28, %v1560_v28 }
 0xbac   : > { %1589 = vst.msk [vmem:[%s319_s11 + $0x4] sm:$0xf] %vm1587_vm7, %v1762_v29 }
 0xbad PF: > { %s16_s23 = sadd.s32 1, %s2088_s23   ;;  %s2406_s21 = smov %s2084_s22 }
 0xbae   : > { %p13_p5 = scmp.ge.s32.totalorder %s16_s23, 8   ;;  %s2407_s22 = smov %s2409_s24 }
 0xbb0   :  { %15 = sbr.rel (!%p13_p5) target bundleno = 2 (0x2), region = 80 }

// kernel: _lambda_.8
= control target key start
LH: loop header
LB: loop body
LE: loop exit
PB: predicated region body
PF: predicated region fallthrough
CT: control target
= control target key end

     0   :  { %s1445_s27 = smov 0   ;;  %s1895_s0 = inlined_call_operand.vmem [shape: f32[160,32], index: 0, kind: input, shape index: {}]   ;;  %s1896_s1 = inlined_call_operand.vmem [shape: bf16[160,32], index: 1, kind: input, shape index: {}]   ;;  %s1897_s2 = inlined_call_operand.vmem [shape: f32[1,32], index: 2, kind: input, shape index: {}]   ;;  %s1898_s3 = inlined_call_operand.vmem [shape: f32[1,32], index: 3, kind: input, shape index: {}]   ;;  %s1899_s4 = inlined_call_operand.vmem [shape: bf16[32,128], index: 4, kind: input, shape index: {}]   ;;  %s1900_s5 = inlined_call_operand.vmem [shape: f32[1,128], index: 5, kind: input, shape index: {}]   ;;  %s1901_s6 = inlined_call_operand.vmem [shape: bf16[128,32], index: 6, kind: input, shape index: {}]   ;;  %s1902_s7 = inlined_call_operand.vmem [shape: f32[1,32], index: 7, kind: input, shape index: {}]   ;;  %s1903_s8 = inlined_call_operand.vmem [shape: f32[160,32], index: 8, kind: output, shape index: {}]  }
   0x1 LB: > { %s1161_s28 = sadd.s32 4294967295, %s1396_s27   ;;  %p1165_p0 = scmp.ge.s32.totalorder %s1396_s27, 1  ;;  %s1396_s27 = sphi %s1445_s27, %s18_s27  }
   0x2   : > { %p274_p1 = scmp.lt.s32.totalorder %s1396_s27, 3 }
   0x4   : > { %p275_p2 = pnand %p1165_p0, %p274_p1 }
   0x5   : > { %s313_s29 = smul.u32 (!%p275_p2), 10, %s1161_s28 }
   0x6   : > { %278 = sbr.rel (%p275_p2) target bundleno = 836 (0x344), region = 52 }
   0x7   : > { %p314_p3 = scmp.lt.s32.totalorder (!%p275_p2), %s313_s29, 19 }
   0xb   : > { %s1905_s29 = smov (!%p314_p3, %s313_s29), 19  ;;  %vm374_vm0 = vcmask 261120   ;;  %vm1399_vm1 = vmmov 0  }
   0xc   : > { %s1166_s30 = sshll.u32 %s1905_s29, 3  ;;  %s1167_s9 = sshll.u32 %s1905_s29, 2 }
   0xd   : > { %s1462_s12 = scalar_lea.vmem %s1895_s0, %s1166_s30  ;;  %s1467_s15 = scalar_lea.vmem %s1896_s1, %s1167_s9 }
   0xe   : > { %v332_v0 = vld [vmem:[%s1462_s12] sm:$0xff]  ;;  %v334_v2 = vld [vmem:[%s1462_s12 + $0x10] sm:$0xff]  ;;  %v1210_v4 = vld [vmem:[%s1467_s15 + $0x8] sm:$0xff]   ;;  %s1860_s28 = scalar_lea.vmem %s1903_s8, %s1166_s30 }
   0xf   : > { %v1191_v1 = vld [vmem:[%s1467_s15] sm:$0xff]   ;;  %v333_v5 = vld [vmem:[%s1462_s12 + $0x8] sm:$0xff]  ;;  %v335_v7 = vld [vmem:[%s1462_s12 + $0x18] sm:$0xff]  ;;  %v1196_v8 = vunpack.c.l.bf16 %v1210_v4  ;;  %v1197_v9 = vunpack.c.h.bf16 %v1210_v4 }
  0x10   : > { %v1192_v3 = vunpack.c.l.bf16 %v1191_v1  ;;  %v1193_v6 = vunpack.c.h.bf16 %v1191_v1  ;;  %v1211_v10 = vld [vmem:[%s1467_s15 + $0x10] sm:$0xff]   ;;  %v336_v16 = vld [vmem:[%s1462_s12 + $0x20] sm:$0xff]  ;;  %v1212_v18 = vld [vmem:[%s1467_s15 + $0x18] sm:$0xff]  }
  0x11   : > { %v1200_v13 = vunpack.c.l.bf16 %v1211_v10  ;;  %v1480_v14 = vadd.f32 %v1196_v8, %v334_v2  ;;  %v1482_v15 = vadd.f32 %v1197_v9, %v335_v7  ;;  %v1201_v17 = vunpack.c.h.bf16 %v1211_v10  ;;  %v337_v20 = vld [vmem:[%s1462_s12 + $0x28] sm:$0xff]  ;;  %v338_v27 = vld [vmem:[%s1462_s12 + $0x30] sm:$0xff]  ;;  %v1213_v29 = vld [vmem:[%s1467_s15 + $0x20] sm:$0xff]  }
  0x12   : > { %v1476_v11 = vadd.f32 %v1192_v3, %v332_v0  ;;  %v1478_v12 = vadd.f32 %v1193_v6, %v333_v5  ;;  %v1204_v24 = vunpack.c.l.bf16 %v1212_v18  ;;  %v1205_v28 = vunpack.c.h.bf16 %v1212_v18  ;;  %v339_v30 = vld [vmem:[%s1462_s12 + $0x38] sm:$0xff]  ;;  %v340_v36 = vld [vmem:[%s1462_s12 + $0x40] sm:$0xff]  ;;  %v341_v38 = vld [vmem:[%s1462_s12 + $0x48] sm:$0xff] }
  0x13   : > { %v381_v21 = vsel %vm374_vm0, %v1480_v14, 0.0  ;;  %v1493_v23 = vadd.f32 %v1200_v13, %v336_v16  ;;  %v384_v25 = vsel %vm374_vm0, %v1482_v15, 0.0  ;;  %v1497_v26 = vadd.f32 %v1201_v17, %v337_v20 }
  0x14   : > { %v375_v19 = vsel %vm374_vm0, %v1476_v11, 0.0  ;;  %382 = vadd.xlane.f32.xlu1 %v381_v21  ;;  %v378_v22 = vsel %vm374_vm0, %v1478_v12, 0.0  ;;  %v1504_v32 = vadd.f32 %v1204_v24, %v338_v27  ;;  %v1208_v33 = vunpack.c.l.bf16 %v1213_v29 }
  0x15   : > { %376 = vadd.xlane.f32.xlu0 %v375_v19  ;;  %v387_v31 = vsel %vm374_vm0, %v1493_v23, 0.0  ;;  %v390_v34 = vsel %vm374_vm0, %v1497_v26, 0.0  ;;  %v1508_v35 = vadd.f32 %v1205_v28, %v339_v30  ;;  %v1209_v37 = vunpack.c.h.bf16 %v1213_v29 }
  0x16   : > { %v393_v39 = vsel %vm374_vm0, %v1504_v32, 0.0  ;;  %v1514_v40 = vadd.f32 %v1208_v33, %v340_v36 }
  0x17   : > { %v396_v41 = vsel %vm374_vm0, %v1508_v35, 0.0  ;;  %v1518_v42 = vadd.f32 %v1209_v37, %v341_v38 }
  0x18   : > { %385 = vadd.xlane.f32.xlu1 %v384_v25  ;;  %v399_v43 = vsel %vm374_vm0, %v1514_v40, 0.0 }
  0x19   : > { %379 = vadd.xlane.f32.xlu0 %v378_v22  ;;  %v402_v44 = vsel %vm374_vm0, %v1518_v42, 0.0 }
  0x1c   : > { %391 = vadd.xlane.f32.xlu1 %v390_v34 }
  0x1d   : > { %388 = vadd.xlane.f32.xlu0 %v387_v31 }
  0x20   : > { %397 = vadd.xlane.f32.xlu1 %v396_v41  ;;  %v1398_v41 = vmov 0.0  }
  0x21   : > { %394 = vadd.xlane.f32.xlu0 %v393_v39  ;;  %v1320_v39 = vld [vmem:[%s1899_s4 + $0x8] sm:$0xff]   ;;  %1234 = vmatprep.subr.bf16.mxu0 %v1398_v41 }
  0x22   : > { %1294 = vmatprep.subr.bf16.mxu1 %v1398_v41  ;;  %1235 = vmatpush3.bf16.msra.mxu0 %v1320_v39 }
  0x23   : > { %1236 = vmatprep.subr.bf16.mxu0 %v1398_v41  ;;  %1238 = vmatprep.mubr.msk.bf16.mxu0 %vm1399_vm1, %v1398_v41 }
  0x24   : > { %403 = vadd.xlane.f32.xlu1 %v402_v44  ;;  %1278 = vmatprep.mubr.msk.bf16.mxu1 %vm1399_vm1, %v1398_v41 }
  0x25   : > { %400 = vadd.xlane.f32.xlu0 %v399_v43  ;;  %v1321_v43 = vld [vmem:[%s1899_s4] sm:$0xff]  }
  0x26   : > { %1237 = vmatpush3.bf16.msra.mxu0 %v1321_v43 }
  0x27   : > { %1258 = vmatprep.subr.bf16.mxu0 %v1398_v41 }
  0x9d   : > { %v383_v47 = vpop.xlane.xlu1 %382 }
  0x9e   : > { %v377_v45 = vpop.xlane.xlu0 %376  ;;  %v408_v48 = vmul.f32 0.03125, %v383_v47 }
  0x9f   : > { %v406_v46 = vmul.f32 0.03125, %v377_v45 }
  0xa0   : > { %v1528_v50 = vsub.f32 %v1480_v14, %v408_v48 }
  0xa1   : > { %v1525_v49 = vsub.f32 %v1476_v11, %v406_v46  ;;  %v386_v53 = vpop.xlane.xlu1 %385 }
  0xa2   : > { %v380_v51 = vpop.xlane.xlu0 %379  ;;  %v409_v55 = vmul.f32 0.03125, %v386_v53  ;;  %v428_v56 = vmul.f32 %v1528_v50, %v1528_v50 }
  0xa3   : > { %v407_v52 = vmul.f32 0.03125, %v380_v51  ;;  %v426_v54 = vmul.f32 %v1525_v49, %v1525_v49 }
  0xa4   : > { %v1539_v59 = vsub.f32 %v1482_v15, %v409_v55  ;;  %v442_v63 = vsel %vm374_vm0, %v428_v56, 0.0 }
  0xa5   : > { %v1535_v57 = vsub.f32 %v1478_v12, %v407_v52  ;;  %v436_v58 = vsel %vm374_vm0, %v426_v54, 0.0  ;;  %v392_v62 = vpop.xlane.xlu1 %391 }
  0xa6   : > { %437 = vadd.xlane.f32.xlu0 %v436_v58  ;;  %v389_v60 = vpop.xlane.xlu0 %388  ;;  %v411_v1 = vmul.f32 0.03125, %v392_v62  ;;  %v429_v2 = vmul.f32 %v1539_v59, %v1539_v59 }
  0xa7   : > { %v410_v61 = vmul.f32 0.03125, %v389_v60  ;;  %v427_v0 = vmul.f32 %v1535_v57, %v1535_v57 }
  0xa8   : > { %v1551_v5 = vsub.f32 %v1497_v26, %v411_v1  ;;  %v445_v9 = vsel %vm374_vm0, %v429_v2, 0.0 }
  0xa9   : > { %v1547_v3 = vsub.f32 %v1493_v23, %v410_v61  ;;  %v439_v4 = vsel %vm374_vm0, %v427_v0, 0.0  ;;  %v398_v8 = vpop.xlane.xlu1 %397 }
  0xaa   : > { %443 = vadd.xlane.f32.xlu0 %v442_v63  ;;  %440 = vadd.xlane.f32.xlu1 %v439_v4  ;;  %v395_v6 = vpop.xlane.xlu0 %394  ;;  %v413_v13 = vmul.f32 0.03125, %v398_v8  ;;  %v431_v16 = vmul.f32 %v1551_v5, %v1551_v5 }
  0xab   : > { %v412_v7 = vmul.f32 0.03125, %v395_v6  ;;  %v430_v10 = vmul.f32 %v1547_v3, %v1547_v3 }
  0xac   : > { %v1563_v19 = vsub.f32 %v1508_v35, %v413_v13  ;;  %v451_v24 = vsel %vm374_vm0, %v431_v16, 0.0 }
  0xad   : > { %v1559_v17 = vsub.f32 %v1504_v32, %v412_v7  ;;  %v448_v18 = vsel %vm374_vm0, %v430_v10, 0.0  ;;  %v404_v22 = vpop.xlane.xlu1 %403  ;;  %v1169_v10 = vld [vmem:[%s1897_s2] ss:$0 sm:$0xff] }
  0xae   : > { %446 = vadd.xlane.f32.xlu1 %v445_v9  ;;  %449 = vadd.xlane.f32.xlu0 %v448_v18  ;;  %v401_v20 = vpop.xlane.xlu0 %400  ;;  %v415_v27 = vmul.f32 0.03125, %v404_v22  ;;  %v433_v28 = vmul.f32 %v1563_v19, %v1563_v19 }
  0xaf   : > { %v414_v21 = vmul.f32 0.03125, %v401_v20  ;;  %v432_v25 = vmul.f32 %v1559_v17, %v1559_v17 }
  0xb0   : > { %v1575_v31 = vsub.f32 %v1518_v42, %v415_v27  ;;  %v457_v33 = vsel %vm374_vm0, %v433_v28, 0.0  ;;  %v1170_v27 = vld [vmem:[%s1898_s3] ss:$0 sm:$0xff] }
  0xb1   : > { %v1571_v29 = vsub.f32 %v1514_v40, %v414_v21  ;;  %v454_v30 = vsel %vm374_vm0, %v432_v25, 0.0 }
  0xb2   : > { %452 = vadd.xlane.f32.xlu1 %v451_v24  ;;  %455 = vadd.xlane.f32.xlu0 %v454_v30  ;;  %v435_v36 = vmul.f32 %v1575_v31, %v1575_v31 }
  0xb3   : > { %v434_v34 = vmul.f32 %v1571_v29, %v1571_v29 }
  0xb4   : > { %v463_v38 = vsel %vm374_vm0, %v435_v36, 0.0 }
  0xb5   : > { %v460_v37 = vsel %vm374_vm0, %v434_v34, 0.0 }
  0xb6   : > { %458 = vadd.xlane.f32.xlu1 %v457_v33  ;;  %461 = vadd.xlane.f32.xlu0 %v460_v37 }
  0xba   : > { %464 = vadd.xlane.f32.xlu1 %v463_v38 }
 0x12f   : > { %v438_v44 = vpop.xlane.xlu0 %437 }
 0x130   : > { %v466_v45 = vmul.f32 0.03125, %v438_v44 }
 0x132   : > { %v476_v46 = vadd.f32 1e-05, %v466_v45 }
 0x133   : > { %v441_v47 = vpop.xlane.xlu1 %440  ;;  %v444_v48 = vpop.xlane.xlu0 %443 }
 0x134   : > { %1330 = vrsqrt.f32 %v476_v46  ;;  %v467_v51 = vmul.f32 0.03125, %v441_v47  ;;  %v468_v52 = vmul.f32 0.03125, %v444_v48 }
 0x136   : > { %v477_v53 = vadd.f32 1e-05, %v467_v51  ;;  %v478_v54 = vadd.f32 1e-05, %v468_v52 }
 0x137   : > { %v447_v55 = vpop.xlane.xlu1 %446  ;;  %v450_v56 = vpop.xlane.xlu0 %449 }
 0x138   : > { %1332 = vrsqrt.f32 %v477_v53  ;;  %v469_v58 = vmul.f32 0.03125, %v447_v55  ;;  %v470_v61 = vmul.f32 0.03125, %v450_v56 }
 0x139   : > { %1334 = vrsqrt.f32 %v478_v54 }
 0x13a   : > { %v479_v60 = vadd.f32 1e-05, %v469_v58  ;;  %v480_v0 = vadd.f32 1e-05, %v470_v61 }
 0x13b   : > { %v453_v62 = vpop.xlane.xlu1 %452  ;;  %v456_v2 = vpop.xlane.xlu0 %455 }
 0x13c   : > { %1336 = vrsqrt.f32 %v479_v60  ;;  %v471_v63 = vmul.f32 0.03125, %v453_v62  ;;  %v472_v8 = vmul.f32 0.03125, %v456_v2 }
 0x13e   : > { %v481_v1 = vadd.f32 1e-05, %v471_v63  ;;  %v482_v18 = vadd.f32 1e-05, %v472_v8 }
 0x13f   : > { %v459_v4 = vpop.xlane.xlu1 %458  ;;  %v462_v21 = vpop.xlane.xlu0 %461 }
 0x140   : > { %1338 = vrsqrt.f32 %v481_v1  ;;  %v473_v6 = vmul.f32 0.03125, %v459_v4  ;;  %v474_v33 = vmul.f32 0.03125, %v462_v21  ;;  %v1327_v21 = vld [vmem:[%s1901_s6 + $0x10] sm:$0xff]  }
 0x141   : > { %v1331_v7 = vpop.eup %1330  ;;  %1340 = vrsqrt.f32 %v480_v0 }
 0x142   : > { %v496_v9 = vmul.f32 %v1331_v7, %v1525_v49  ;;  %v483_v13 = vadd.f32 1e-05, %v473_v6  ;;  %v484_v45 = vadd.f32 1e-05, %v474_v33 }
 0x143   : > { %v465_v20 = vpop.xlane.xlu1 %464 }
 0x144   : > { %v512_v24 = vmul.f32 %v1169_v10, %v496_v9  ;;  %1342 = vrsqrt.f32 %v483_v13  ;;  %v475_v28 = vmul.f32 0.03125, %v465_v20  ;;  %v1326_v20 = vld [vmem:[%s1901_s6 + $0x18] sm:$0xff]  }
 0x145   : > { %v1333_v16 = vpop.eup %1332  ;;  %1344 = vrsqrt.f32 %v482_v18  ;;  %v1325_v18 = vld [vmem:[%s1901_s6 + $0x20] sm:$0xff]  }
 0x146   : > { %v497_v22 = vmul.f32 %v1333_v16, %v1535_v57  ;;  %v1335_v25 = vpop.eup %1334  ;;  %v528_v34 = vadd.f32 %v1170_v27, %v512_v24  ;;  %v485_v39 = vadd.f32 1e-05, %v475_v28  ;;  %v1329_v24 = vld [vmem:[%s1901_s6] sm:$0xff]  }
 0x147   : > { %v498_v37 = vmul.f32 %v1335_v25, %v1528_v50  ;;  %v1670_v25 = vld [vmem:[%s1900_s5] ss:$0 sm:$0xff] }
 0x148   : > { %v513_v49 = vmul.f32 %v1169_v10, %v497_v22  ;;  %1346 = vrsqrt.f32 %v485_v39  ;;  %v1328_v22 = vld [vmem:[%s1901_s6 + $0x8] sm:$0xff]  }
 0x149   : > { %v1337_v30 = vpop.eup %1336  ;;  %v514_v46 = vmul.f32 %v1169_v10, %v498_v37  ;;  %1348 = vrsqrt.f32 %v484_v45 }
 0x14a   : > { %v529_v36 = vadd.f32 %v1170_v27, %v513_v49  ;;  %v499_v38 = vmul.f32 %v1337_v30, %v1539_v59 }
 0x14b   : > { %v530_v50 = vadd.f32 %v1170_v27, %v514_v46 }
 0x14c   : > { %v538_v57 = vpack.c.bf16 %v529_v36, %v528_v34  ;;  %v515_v43 = vmul.f32 %v1169_v10, %v499_v38 }
 0x14d   : > { %v1339_v44 = vpop.eup %1338 }
 0x14e   : > { %1239 = vmatmul.mubr.msk.bf16.vlgmr.msra.gmra.mxu0 %vm374_vm0, %v538_v57  ;;  %v1341_v47 = vpop.eup %1340  ;;  %v531_v48 = vadd.f32 %v1170_v27, %v515_v43  ;;  %v501_v51 = vmul.f32 %v1339_v44, %v1551_v5 }
 0x14f   : > { %1242 = vmatprep.mubr.msk.bf16.mxu0 %vm1399_vm1, %v1398_v41  ;;  %v500_v59 = vmul.f32 %v1341_v47, %v1547_v3 }
 0x150   : > { %v539_v52 = vpack.c.bf16 %v531_v48, %v530_v50  ;;  %v517_v53 = vmul.f32 %v1169_v10, %v501_v51 }
 0x151   : > { %v1343_v54 = vpop.eup %1342  ;;  %v516_v56 = vmul.f32 %v1169_v10, %v500_v59 }
 0x152   : > { %v1345_v55 = vpop.eup %1344  ;;  %v533_v58 = vadd.f32 %v1170_v27, %v517_v53  ;;  %v503_v60 = vmul.f32 %v1343_v54, %v1563_v19 }
 0x153   : > { %v532_v61 = vadd.f32 %v1170_v27, %v516_v56  ;;  %v502_v5 = vmul.f32 %v1345_v55, %v1559_v17 }
 0x154   : > { %v519_v63 = vmul.f32 %v1169_v10, %v503_v60 }
 0x155   : > { %v540_v62 = vpack.c.bf16 %v533_v58, %v532_v61  ;;  %v1347_v0 = vpop.eup %1346  ;;  %v518_v3 = vmul.f32 %v1169_v10, %v502_v5 }
 0x156   : > { %1243 = vmatmul.mubr.msk.bf16.gmra.mxu0 %vm374_vm0, %v539_v52  ;;  %v1349_v1 = vpop.eup %1348  ;;  %v535_v2 = vadd.f32 %v1170_v27, %v519_v63  ;;  %v505_v4 = vmul.f32 %v1347_v0, %v1575_v31  ;;  %v1323_v31 = vld [vmem:[%s1901_s6 + $0x30] sm:$0xff]  }
 0x157   : > { %1246 = vmatprep.mubr.msk.bf16.mxu0 %vm1399_vm1, %v1398_v41  ;;  %v534_v6 = vadd.f32 %v1170_v27, %v518_v3  ;;  %v504_v7 = vmul.f32 %v1349_v1, %v1571_v29  ;;  %v1322_v29 = vld [vmem:[%s1901_s6 + $0x38] sm:$0xff]  }
 0x158   : > { %v521_v8 = vmul.f32 %v1169_v10, %v505_v4  ;;  %1259 = vmatpush3.bf16.msra.mxu0 %v1322_v29  ;;  %1302 = vmatpush3.bf16.msra.mxu1 %v1322_v29 }
 0x159   : > { %v541_v19 = vpack.c.bf16 %v535_v2, %v534_v6  ;;  %v520_v17 = vmul.f32 %v1169_v10, %v504_v7  ;;  %1260 = vmatprep.subr.bf16.mxu0 %v1398_v41  ;;  %1295 = vmatprep.subr.bf16.mxu1 %v1398_v41  ;;  %v1324_v10 = vld [vmem:[%s1901_s6 + $0x28] sm:$0xff]  }
 0x15a   : > { %v537_v9 = vadd.f32 %v1170_v27, %v521_v8 }
 0x15b   : > { %v536_v13 = vadd.f32 %v1170_v27, %v520_v17 }
 0x15c   : > { %1261 = vmatpush3.bf16.msra.mxu0 %v1323_v31  ;;  %1303 = vmatpush3.bf16.msra.mxu1 %v1323_v31 }
 0x15d   : > { %v542_v16 = vpack.c.bf16 %v537_v9, %v536_v13  ;;  %1262 = vmatprep.subr.bf16.mxu0 %v1398_v41  ;;  %1296 = vmatprep.subr.bf16.mxu1 %v1398_v41 }
 0x15e   : > { %1247 = vmatmul.mubr.msk.bf16.gmra.mxu0 %vm374_vm0, %v540_v62 }
 0x15f   : > { %1250 = vmatprep.mubr.msk.bf16.mxu0 %vm1399_vm1, %v1398_v41 }
 0x160   : > { %1263 = vmatpush3.bf16.msra.mxu0 %v1324_v10  ;;  %1304 = vmatpush3.bf16.msra.mxu1 %v1324_v10 }
 0x161   : > { %1264 = vmatprep.subr.bf16.mxu0 %v1398_v41  ;;  %1297 = vmatprep.subr.bf16.mxu1 %v1398_v41 }
 0x164   : > { %1265 = vmatpush3.bf16.msra.mxu0 %v1325_v18  ;;  %1305 = vmatpush3.bf16.msra.mxu1 %v1325_v18 }
 0x165   : > { %1266 = vmatprep.subr.bf16.mxu0 %v1398_v41  ;;  %1298 = vmatprep.subr.bf16.mxu1 %v1398_v41 }
 0x166   : > { %1251 = vmatmul.mubr.msk.bf16.gmra.mxu0 %vm374_vm0, %v541_v19 }
 0x167   : > { %1254 = vmatprep.mubr.msk.bf16.mxu0 %vm1399_vm1, %v1398_v41 }
 0x168   : > { %1267 = vmatpush3.bf16.msra.mxu0 %v1326_v20  ;;  %1306 = vmatpush3.bf16.msra.mxu1 %v1326_v20 }
 0x169   : > { %1268 = vmatprep.subr.bf16.mxu0 %v1398_v41  ;;  %1299 = vmatprep.subr.bf16.mxu1 %v1398_v41 }
 0x16c   : > { %1269 = vmatpush3.bf16.msra.mxu0 %v1327_v21  ;;  %1307 = vmatpush3.bf16.msra.mxu1 %v1327_v21 }
 0x16d   : > { %1270 = vmatprep.subr.bf16.mxu0 %v1398_v41  ;;  %1300 = vmatprep.subr.bf16.mxu1 %v1398_v41 }
 0x16e   : > { %1255 = vmatmul.mubr.msk.bf16.gmra.mxu0 %vm374_vm0, %v542_v16 }
 0x16f   : > { %1274 = vmatprep.mubr.msk.bf16.mxu0 %vm1399_vm1, %v1398_v41 }
 0x170   : > { %1271 = vmatpush3.bf16.msra.mxu0 %v1328_v22  ;;  %1308 = vmatpush3.bf16.msra.mxu1 %v1328_v22 }
 0x171   : > { %1272 = vmatprep.subr.bf16.mxu0 %v1398_v41  ;;  %1301 = vmatprep.subr.bf16.mxu1 %v1398_v41 }
 0x174   : > { %1273 = vmatpush3.bf16.msra.mxu0 %v1329_v24  ;;  %1309 = vmatpush3.bf16.msra.mxu1 %v1329_v24 }
 0x20e   : > { %v615_v27 = vpop.f32.mrf.mxu0 }
 0x20f   : > { %v616_v28 = vadd.f32 %v1670_v25, %v615_v27 }
 0x210   : > { %v1240_v49 = vpop.f32.mrf.mxu0 }
 0x211   : > { %v1673_v30 = vmul.f32 0.70710677, %v616_v28  ;;  %v1707_v20 = vmul.f32 0.5, %v616_v28 }
 0x212   : > { %v618_v33 = vpop.f32.mrf.mxu0 }
 0x213   : > { %v674_v34 = vand.u32 2147483647, %v1673_v30  ;;  %v619_v36 = vadd.f32 %v1670_v25, %v618_v33  ;;  %vm874_vm2 = vcmp.ge.f32.partialorder %v1673_v30, 0.0 }
 0x214   : > { %v1241_v37 = vpop.f32.mrf.mxu0 }
 0x215   : > { %v684_v38 = vmul.f32 0.3275911, %v674_v34  ;;  %v1677_v39 = vmul.f32 0.70710677, %v619_v36  ;;  %v814_v55 = vsub.f32 0.0, %v674_v34  ;;  %v1713_v33 = vmul.f32 0.5, %v619_v36 }
 0x216   : > { %v623_v57 = vpop.f32.mrf.mxu0 }
 0x217   : > { %v694_v43 = vadd.f32 1.0, %v684_v38  ;;  %v675_v44 = vand.u32 2147483647, %v1677_v39  ;;  %v1681_v45 = vadd.f32 %v1670_v25, %v623_v57  ;;  %v824_v1 = vmul.f32 %v814_v55, %v674_v34 }
 0x218   : > { %v1244_v46 = vpop.f32.mrf.mxu0  ;;  %vm875_vm3 = vcmp.ge.f32.partialorder %v1677_v39, 0.0 }
 0x219   : > { %1350 = vrcp.f32 %v694_v43  ;;  %v685_v47 = vmul.f32 0.3275911, %v675_v44  ;;  %v1684_v48 = vmul.f32 0.70710677, %v1681_v45  ;;  %v815_v63 = vsub.f32 0.0, %v675_v44 }
 0x21a   : > { %v626_v51 = vpop.f32.mrf.mxu0  ;;  %v834_v13 = vmul.f32 1.442695, %v824_v1 }
 0x21b   : > { %v695_v50 = vadd.f32 1.0, %v685_v47  ;;  %v627_v59 = vadd.f32 %v1670_v25, %v626_v51  ;;  %v676_v52 = vand.u32 2147483647, %v1684_v48  ;;  %v825_v8 = vmul.f32 %v815_v63, %v675_v44 }
 0x21c   : > { %v1245_v53 = vpop.f32.mrf.mxu0  ;;  %vm876_vm4 = vcmp.ge.f32.partialorder %v1684_v48, 0.0 }
 0x21d   : > { %1352 = vrcp.f32 %v695_v50  ;;  %v1688_v54 = vmul.f32 0.70710677, %v627_v59  ;;  %v686_v56 = vmul.f32 0.3275911, %v676_v52  ;;  %v816_v10 = vsub.f32 0.0, %v676_v52 }
 0x21e   : > { %v631_v58 = vpop.f32.mrf.mxu0  ;;  %v836_v34 = vmul.f32 1.442695, %v825_v8  ;;  %v1729_v63 = vmul.f32 0.5, %v627_v59 }
 0x21f   : > { %v677_v60 = vand.u32 2147483647, %v1688_v54  ;;  %v1692_v61 = vadd.f32 %v1670_v25, %v631_v58  ;;  %v696_v5 = vadd.f32 1.0, %v686_v56  ;;  %v826_v47 = vmul.f32 %v816_v10, %v676_v52 }
 0x220   : > { %v1248_v62 = vpop.f32.mrf.mxu0  ;;  %vm877_vm5 = vcmp.ge.f32.partialorder %v1688_v54, 0.0 }
 0x221   : > { %v687_v0 = vmul.f32 0.3275911, %v677_v60  ;;  %v1695_v3 = vmul.f32 0.70710677, %v1692_v61  ;;  %1354 = vrcp.f32 %v696_v5  ;;  %v817_v21 = vsub.f32 0.0, %v677_v60 }
 0x222   : > { %v634_v2 = vpop.f32.mrf.mxu0  ;;  %v1727_v62 = vmul.f32 0.5, %v1681_v45 }
 0x223   : > { %v697_v4 = vadd.f32 1.0, %v687_v0  ;;  %v678_v6 = vand.u32 2147483647, %v1695_v3  ;;  %v1699_v7 = vadd.f32 %v1670_v25, %v634_v2  ;;  %v827_v36 = vmul.f32 %v817_v21, %v677_v60 }
 0x224   : > { %v1249_v19 = vpop.f32.mrf.mxu0  ;;  %vm878_vm6 = vcmp.ge.f32.partialorder %v1695_v3, 0.0 }
 0x225   : > { %1356 = vrcp.f32 %v697_v4  ;;  %v688_v17 = vmul.f32 0.3275911, %v678_v6  ;;  %v1704_v16 = vmul.f32 0.70710677, %v1699_v7  ;;  %v818_v38 = vsub.f32 0.0, %v678_v6 }
 0x226   : > { %v1701_v9 = vpop.eup %1350  ;;  %v639_v29 = vpop.f32.mrf.mxu0  ;;  %v838_v19 = vmul.f32 1.442695, %v826_v47  ;;  %v840_v45 = vmul.f32 1.442695, %v827_v36 }
 0x227   : > { %v724_v31 = vmul.f32 1.0614054, %v1701_v9  ;;  %v698_v18 = vadd.f32 1.0, %v688_v17  ;;  %v679_v22 = vand.u32 2147483647, %v1704_v16  ;;  %v1711_v24 = vadd.f32 %v1670_v25, %v639_v29 }
 0x228   : > { %v1252_v27 = vpop.f32.mrf.mxu0  ;;  %v828_v0 = vmul.f32 %v818_v38, %v678_v6  ;;  %vm879_vm7 = vcmp.ge.f32.partialorder %v1704_v16, 0.0 }
 0x229   : > { %v734_v49 = vadd.f32 -1.4531521, %v724_v31  ;;  %1358 = vrcp.f32 %v698_v18  ;;  %v689_v57 = vmul.f32 0.3275911, %v679_v22  ;;  %v1718_v28 = vmul.f32 0.70710677, %v1711_v24 }
 0x22a   : > { %v1715_v37 = vpop.eup %1352  ;;  %1360 = vpow2.f32 %v834_v13  ;;  %v642_v43 = vpop.f32.mrf.mxu0  ;;  %v819_v53 = vsub.f32 0.0, %v679_v22  ;;  %v842_v27 = vmul.f32 1.442695, %v828_v0 }
 0x22b   : > { %v744_v44 = vmul.f32 %v1701_v9, %v734_v49  ;;  %v725_v46 = vmul.f32 1.0614054, %v1715_v37  ;;  %v1723_v51 = vadd.f32 %v1670_v25, %v642_v43  ;;  %v699_v50 = vadd.f32 1.0, %v689_v57 }
 0x22c   : > { %v680_v55 = vand.u32 2147483647, %v1718_v28  ;;  %v1253_v56 = vpop.f32.mrf.mxu0  ;;  %1362 = vpow2.f32 %v836_v34  ;;  %v829_v13 = vmul.f32 %v819_v53, %v679_v22  ;;  %vm880_vm8 = vcmp.ge.f32.partialorder %v1718_v28, 0.0 }
 0x22d   : > { %v754_v58 = vadd.f32 1.4214138, %v744_v44  ;;  %v735_v5 = vadd.f32 -1.4531521, %v725_v46  ;;  %1364 = vrcp.f32 %v699_v50  ;;  %v1736_v8 = vmul.f32 0.70710677, %v1723_v51 }
 0x22e   : > { %v690_v52 = vmul.f32 0.3275911, %v680_v55  ;;  %v647_v1 = vpop.f32.mrf.mxu0  ;;  %v1731_v2 = vpop.eup %1354  ;;  %v844_v46 = vmul.f32 1.442695, %v829_v13  ;;  %v820_v47 = vsub.f32 0.0, %v680_v55  ;;  %v661_v28 = vmul.f32 0.5, %v1723_v51 }
 0x22f   : > { %v764_v60 = vmul.f32 %v1701_v9, %v754_v58  ;;  %v745_v4 = vmul.f32 %v1715_v37, %v735_v5  ;;  %v726_v17 = vmul.f32 1.0614054, %v1731_v2  ;;  %v681_v10 = vand.u32 2147483647, %v1736_v8 }
 0x230   : > { %v700_v59 = vadd.f32 1.0, %v690_v52  ;;  %v1256_v29 = vpop.f32.mrf.mxu0  ;;  %v1743_v49 = vadd.f32 %v1670_v25, %v647_v1  ;;  %v830_v13 = vmul.f32 %v820_v47, %v680_v55  ;;  %vm881_vm9 = vcmp.ge.f32.partialorder %v1736_v8, 0.0 }
 0x231   : > { %v774_v6 = vadd.f32 -0.28449672, %v764_v60  ;;  %v755_v31 = vadd.f32 1.4214138, %v745_v4  ;;  %v736_v21 = vadd.f32 -1.4531521, %v726_v17 }
 0x232   : > { %v1740_v18 = vpop.eup %1356  ;;  %1366 = vrcp.f32 %v700_v59  ;;  %v1745_v34 = vpop.f32.mrf.mxu0  ;;  %v691_v43 = vmul.f32 0.3275911, %v681_v10  ;;  %v1755_v52 = vmul.f32 0.70710677, %v1743_v49 }
 0x233   : > { %v784_v38 = vmul.f32 %v1701_v9, %v774_v6  ;;  %v765_v22 = vmul.f32 %v1715_v37, %v755_v31  ;;  %v727_v57 = vmul.f32 1.0614054, %v1740_v18  ;;  %v746_v44 = vmul.f32 %v1731_v2, %v736_v21 }
 0x234   : > { %1368 = vpow2.f32 %v838_v19  ;;  %v1257_v36 = vpop.f32.mrf.mxu0  ;;  %v701_v0 = vadd.f32 1.0, %v691_v43  ;;  %v1763_v59 = vand.u32 2147483647, %v1755_v52  ;;  %vm882_vm10 = vcmp.ge.f32.partialorder %v1755_v52, 0.0  ;;  %v1179_v52 = vld [vmem:[%s1902_s7] ss:$0 sm:$0xff] }
 0x235   : > { %v794_v50 = vadd.f32 0.2548296, %v784_v38  ;;  %v775_v53 = vadd.f32 -0.28449672, %v765_v22  ;;  %v737_v56 = vadd.f32 -1.4531521, %v727_v57  ;;  %1370 = vpow2.f32 %v840_v45 }
 0x236   : > { %v1751_v58 = vpop.eup %1358  ;;  %v756_v5 = vadd.f32 1.4214138, %v746_v44  ;;  %1372 = vpow2.f32 %v842_v27  ;;  %v821_v38 = vsub.f32 0.0, %v681_v10  ;;  %v692_v22 = vmul.f32 0.3275911, %v1763_v59 }
 0x237   : > { %v1361_v1 = vpop.eup %1360  ;;  %v804_v60 = vmul.f32 %v1701_v9, %v794_v50  ;;  %v785_v4 = vmul.f32 %v1715_v37, %v775_v53  ;;  %v747_v19 = vmul.f32 %v1740_v18, %v737_v56  ;;  %v728_v17 = vmul.f32 1.0614054, %v1751_v58 }
 0x238   : > { %v766_v45 = vmul.f32 %v1731_v2, %v756_v5  ;;  %1374 = vrcp.f32 %v701_v0  ;;  %v846_v53 = vmul.f32 1.442695, %v830_v13  ;;  %v702_v56 = vadd.f32 1.0, %v692_v22 }
 0x239   : > { %v854_v29 = vmul.f32 %v1361_v1, %v804_v60  ;;  %v795_v6 = vadd.f32 0.2548296, %v785_v4  ;;  %v757_v31 = vadd.f32 1.4214138, %v747_v19  ;;  %v738_v21 = vadd.f32 -1.4531521, %v728_v17  ;;  %v1363_v27 = vpop.eup %1362 }
 0x23a   : > { %v776_v9 = vadd.f32 -0.28449672, %v766_v45  ;;  %1376 = vpow2.f32 %v844_v46  ;;  %v1767_v57 = vpop.eup %1364  ;;  %v831_v19 = vmul.f32 %v821_v38, %v681_v10  ;;  %v1786_v10 = vadd.f32 %v1670_v25, %v1745_v34 }
 0x23b   : > { %v864_v43 = vsub.f32 1.0, %v854_v29  ;;  %v805_v55 = vmul.f32 %v1715_v37, %v795_v6  ;;  %v767_v44 = vmul.f32 %v1740_v18, %v757_v31  ;;  %v748_v47 = vmul.f32 %v1751_v58, %v738_v21 }
 0x23c   : > { %v786_v36 = vmul.f32 %v1731_v2, %v776_v9  ;;  %v729_v50 = vmul.f32 1.0614054, %v1767_v57  ;;  %1378 = vrcp.f32 %v702_v56  ;;  %v848_v34 = vmul.f32 1.442695, %v831_v19 }
 0x23d   : > { %v884_v5 = vsub.f32 0.0, %v864_v43  ;;  %v855_v46 = vmul.f32 %v1363_v27, %v805_v55  ;;  %v777_v0 = vadd.f32 -0.28449672, %v767_v44  ;;  %v758_v1 = vadd.f32 1.4214138, %v748_v47 }
 0x23e   : > { %v796_v60 = vadd.f32 0.2548296, %v786_v36  ;;  %v739_v4 = vadd.f32 -1.4531521, %v729_v50  ;;  %1380 = vpow2.f32 %v846_v53  ;;  %v1799_v39 = vmul.f32 0.70710677, %v1786_v10 }
 0x23f   : > { %v1774_v17 = vpop.eup %1366  ;;  %v894_v37 = vsel %vm874_vm2, %v864_v43, %v884_v5  ;;  %v865_v45 = vsub.f32 1.0, %v855_v46  ;;  %v787_v29 = vmul.f32 %v1740_v18, %v777_v0  ;;  %v768_v13 = vmul.f32 %v1751_v58, %v758_v1 }
 0x240   : > { %v806_v6 = vmul.f32 %v1731_v2, %v796_v60  ;;  %v749_v31 = vmul.f32 %v1767_v57, %v739_v4  ;;  %v730_v21 = vmul.f32 1.0614054, %v1774_v17  ;;  %v904_v30 = vadd.f32 1.0, %v894_v37 }
 0x241   : > { %v1369_v27 = vpop.eup %1368  ;;  %v885_v9 = vsub.f32 0.0, %v865_v45  ;;  %v797_v38 = vadd.f32 0.2548296, %v787_v29  ;;  %v778_v22 = vadd.f32 -0.28449672, %v768_v13  ;;  %1382 = vpow2.f32 %v848_v34 }
 0x242   : > { %v1371_v43 = vpop.eup %1370  ;;  %v856_v55 = vmul.f32 %v1369_v27, %v806_v6  ;;  %v759_v44 = vadd.f32 1.4214138, %v749_v31  ;;  %v740_v47 = vadd.f32 -1.4531521, %v730_v21  ;;  %v914_v60 = vmul.f32 %v904_v30, %v1707_v20 }
 0x243   : > { %v1373_v2 = vpop.eup %1372  ;;  %v895_v36 = vsel %vm875_vm3, %v865_v45, %v885_v9  ;;  %v807_v50 = vmul.f32 %v1740_v18, %v797_v38  ;;  %v788_v25 = vmul.f32 %v1751_v58, %v778_v22  ;;  %v1805_v21 = vand.u32 2147483647, %v1799_v39 }
 0x244   : > { %v905_v56 = vadd.f32 1.0, %v895_v36  ;;  %v866_v5 = vsub.f32 1.0, %v856_v55  ;;  %v769_v46 = vmul.f32 %v1767_v57, %v759_v44  ;;  %v750_v0 = vmul.f32 %v1774_v17, %v740_v47 }
 0x245   : > { %v1795_v1 = vpop.eup %1374  ;;  %v857_v53 = vmul.f32 %v1371_v43, %v807_v50  ;;  %v798_v4 = vadd.f32 0.2548296, %v788_v25  ;;  %v822_v43 = vsub.f32 0.0, %v1763_v59  ;;  %v693_v44 = vmul.f32 0.3275911, %v1805_v21 }
 0x246   : > { %v915_v18 = vmul.f32 %v905_v56, %v1713_v33  ;;  %v886_v37 = vsub.f32 0.0, %v866_v5  ;;  %v779_v45 = vadd.f32 -0.28449672, %v769_v46  ;;  %v760_v19 = vadd.f32 1.4214138, %v750_v0 }
 0x247   : > { %v1377_v29 = vpop.eup %1376  ;;  %v867_v13 = vsub.f32 1.0, %v857_v53  ;;  %v808_v6 = vmul.f32 %v1751_v58, %v798_v4  ;;  %v731_v31 = vmul.f32 1.0614054, %v1795_v1  ;;  %v703_v53 = vadd.f32 1.0, %v693_v44 }
 0x248   : > { %v924_v20 = vpack.c.bf16 %v915_v18, %v914_v60  ;;  %v896_v27 = vsel %vm876_vm4, %v866_v5, %v886_v37  ;;  %v789_v30 = vmul.f32 %v1767_v57, %v779_v45  ;;  %v770_v33 = vmul.f32 %v1774_v17, %v760_v19 }
 0x249   : > { %v887_v9 = vsub.f32 0.0, %v867_v13  ;;  %v858_v38 = vmul.f32 %v1373_v2, %v808_v6  ;;  %v741_v22 = vadd.f32 -1.4531521, %v731_v31  ;;  %v1813_v47 = vpop.eup %1378  ;;  %v906_v36 = vadd.f32 1.0, %v896_v27 }
 0x24a   : > { %v799_v55 = vadd.f32 0.2548296, %v789_v30  ;;  %v780_v58 = vadd.f32 -0.28449672, %v770_v33  ;;  %1275 = vmatmul.mubr.bf16.vlgmr.msra.gmra.mxu0 %v924_v20  ;;  %v732_v46 = vmul.f32 1.0614054, %v1813_v47  ;;  %v832_v60 = vmul.f32 %v822_v43, %v1763_v59 }
 0x24b   : > { %v897_v48 = vsel %vm877_vm5, %v867_v13, %v887_v9  ;;  %v868_v50 = vsub.f32 1.0, %v858_v38  ;;  %v751_v25 = vmul.f32 %v1795_v1, %v741_v22  ;;  %v1381_v45 = vpop.eup %1380  ;;  %v916_v19 = vmul.f32 %v906_v36, %v1727_v62 }
 0x24c   : > { %v907_v56 = vadd.f32 1.0, %v897_v48  ;;  %v809_v2 = vmul.f32 %v1767_v57, %v799_v55  ;;  %v790_v5 = vmul.f32 %v1774_v17, %v780_v58  ;;  %v742_v37 = vadd.f32 -1.4531521, %v732_v46 }
 0x24d   : > { %v888_v34 = vsub.f32 0.0, %v868_v50  ;;  %v761_v0 = vadd.f32 1.4214138, %v751_v25  ;;  %1384 = vrcp.f32 %v703_v53  ;;  %v850_v33 = vmul.f32 1.442695, %v832_v60 }
 0x24e   : > { %v917_v4 = vmul.f32 %v907_v56, %v1729_v63  ;;  %v859_v18 = vmul.f32 %v1377_v29, %v809_v2  ;;  %v800_v54 = vadd.f32 0.2548296, %v790_v5  ;;  %v752_v59 = vmul.f32 %v1813_v47, %v742_v37  ;;  %v1383_v16 = vpop.eup %1382 }
 0x24f   : > { %v771_v57 = vmul.f32 %v1795_v1, %v761_v0  ;;  %v898_v13 = vsel %vm878_vm6, %v868_v50, %v888_v34  ;;  %v658_v43 = vmul.f32 0.5, %v1692_v61  ;;  %v659_v55 = vmul.f32 0.5, %v1699_v7 }
 0x250   : > { %v869_v6 = vsub.f32 1.0, %v859_v18  ;;  %v810_v31 = vmul.f32 %v1774_v17, %v800_v54  ;;  %v925_v27 = vpack.c.bf16 %v917_v4, %v916_v19  ;;  %v762_v30 = vadd.f32 1.4214138, %v752_v59 }
 0x251   : > { %v781_v20 = vadd.f32 -0.28449672, %v771_v57  ;;  %v908_v9 = vadd.f32 1.0, %v898_v13  ;;  %v823_v17 = vsub.f32 0.0, %v1805_v21  ;;  %1386 = vpow2.f32 %v850_v33 }
 0x252   : > { %v889_v63 = vsub.f32 0.0, %v869_v6  ;;  %v860_v29 = vmul.f32 %v1381_v45, %v810_v31  ;;  %1279 = vmatmul.mubr.bf16.vlgmr.msra.gmra.mxu1 %v925_v27  ;;  %v772_v22 = vmul.f32 %v1813_v47, %v762_v30  ;;  %v660_v37 = vmul.f32 0.5, %v1711_v24 }
 0x253   : > { %v791_v3 = vmul.f32 %v1795_v1, %v781_v20  ;;  %1282 = vmatprep.mubr.msk.bf16.mxu1 %vm1399_vm1, %v1398_v41  ;;  %v918_v48 = vmul.f32 %v908_v9, %v658_v43  ;;  %v833_v2 = vmul.f32 %v823_v17, %v1805_v21  ;;  %vm883_vm11 = vcmp.ge.f32.partialorder %v1799_v39, 0.0 }
 0x254   : > { %v899_v62 = vsel %vm879_vm7, %v869_v6, %v889_v63  ;;  %v870_v38 = vsub.f32 1.0, %v860_v29  ;;  %v782_v36 = vadd.f32 -0.28449672, %v772_v22  ;;  %v662_v43 = vmul.f32 0.5, %v1743_v49 }
 0x255   : > { %v909_v58 = vadd.f32 1.0, %v899_v62  ;;  %v801_v44 = vadd.f32 0.2548296, %v791_v3  ;;  %v852_v60 = vmul.f32 1.442695, %v833_v2 }
 0x256   : > { %v890_v25 = vsub.f32 0.0, %v870_v38  ;;  %v792_v46 = vmul.f32 %v1813_v47, %v782_v36 }
 0x257   : > { %v919_v50 = vmul.f32 %v909_v58, %v659_v55  ;;  %v811_v56 = vmul.f32 %v1795_v1, %v801_v44  ;;  %1388 = vpow2.f32 %v852_v60 }
 0x258   : > { %v900_v61 = vsel %vm880_vm8, %v870_v38, %v890_v25  ;;  %v802_v4 = vadd.f32 0.2548296, %v792_v46 }
 0x259   : > { %v861_v5 = vmul.f32 %v1383_v16, %v811_v56  ;;  %v926_v34 = vpack.c.bf16 %v919_v50, %v918_v48  ;;  %v910_v1 = vadd.f32 1.0, %v900_v61 }
 0x25a   : > { %v1385_v0 = vpop.eup %1384  ;;  %v812_v19 = vmul.f32 %v1813_v47, %v802_v4 }
 0x25b   : > { %v871_v7 = vsub.f32 1.0, %v861_v5  ;;  %1283 = vmatmul.mubr.bf16.gmra.mxu1 %v926_v34  ;;  %v733_v18 = vmul.f32 1.0614054, %v1385_v0  ;;  %v920_v13 = vmul.f32 %v910_v1, %v660_v37 }
 0x25c   : > { %1286 = vmatprep.mubr.msk.bf16.mxu1 %vm1399_vm1, %v1398_v41 }
 0x25d   : > { %v891_v53 = vsub.f32 0.0, %v871_v7  ;;  %v743_v54 = vadd.f32 -1.4531521, %v733_v18 }
 0x25e   : > { %v1387_v31 = vpop.eup %1386 }
 0x25f   : > { %v901_v21 = vsel %vm881_vm9, %v871_v7, %v891_v53  ;;  %v753_v57 = vmul.f32 %v1385_v0, %v743_v54  ;;  %v862_v27 = vmul.f32 %v1387_v31, %v812_v19 }
 0x260   : > { %v911_v45 = vadd.f32 1.0, %v901_v21 }
 0x261   : > { %v763_v59 = vadd.f32 1.4214138, %v753_v57  ;;  %v872_v24 = vsub.f32 1.0, %v862_v27 }
 0x262   : > { %v921_v6 = vmul.f32 %v911_v45, %v661_v28 }
 0x263   : > { %v773_v63 = vmul.f32 %v1385_v0, %v763_v59  ;;  %v892_v30 = vsub.f32 0.0, %v872_v24 }
 0x264   : > { %v927_v20 = vpack.c.bf16 %v921_v6, %v920_v13  ;;  %v1389_v47 = vpop.eup %1388 }
 0x265   : > { %v783_v8 = vadd.f32 -0.28449672, %v773_v63  ;;  %v902_v3 = vsel %vm882_vm10, %v872_v24, %v892_v30 }
 0x266   : > { %1287 = vmatmul.mubr.bf16.gmra.mxu1 %v927_v20  ;;  %v912_v22 = vadd.f32 1.0, %v902_v3 }
 0x267   : > { %1290 = vmatprep.mubr.msk.bf16.mxu1 %vm1399_vm1, %v1398_v41  ;;  %v793_v29 = vmul.f32 %v1385_v0, %v783_v8  ;;  %v663_v41 = vmul.f32 0.5, %v1786_v10 }
 0x268   : > { %v922_v58 = vmul.f32 %v912_v22, %v662_v43 }
 0x269   : > { %v803_v51 = vadd.f32 0.2548296, %v793_v29 }
 0x26b   : > { %v813_v33 = vmul.f32 %v1385_v0, %v803_v51 }
 0x26d   : > { %v863_v9 = vmul.f32 %v1389_v47, %v813_v33 }
 0x26f   : > { %v873_v62 = vsub.f32 1.0, %v863_v9 }
 0x271   : > { %v893_v38 = vsub.f32 0.0, %v873_v62 }
 0x273   : > { %v903_v17 = vsel %vm883_vm11, %v873_v62, %v893_v38 }
 0x274   : > { %v913_v55 = vadd.f32 1.0, %v903_v17 }
 0x276   : > { %v923_v44 = vmul.f32 %v913_v55, %v663_v41 }
 0x278   : > { %v928_v36 = vpack.c.bf16 %v923_v44, %v922_v58 }
 0x27a   : > { %1291 = vmatmul.mubr.bf16.gmra.mxu1 %v928_v36 }
 0x30a   : > { %v1034_v16 = vpop.f32.mrf.mxu0 }
 0x30b   : > { %v1035_v48 = vadd.f32 %v1179_v52, %v1034_v16 }
 0x30c   : > { %v1276_v49 = vpop.f32.mrf.mxu0 }
 0x30d   : > { %v1073_v10 = vadd.f32 %v1035_v48, %v1476_v11 }
 0x30e   : > { %v1037_v39 = vpop.f32.mrf.mxu0 }
 0x30f   : > { %1083 = vst.msk [vmem:[%s1860_s28] sm:$0xff] %vm374_vm0, %v1073_v10  ;;  %v1038_v50 = vadd.f32 %v1179_v52, %v1037_v39 }
 0x310   : > { %v1277_v25 = vpop.f32.mrf.mxu0 }
 0x311   : > { %v1074_v56 = vadd.f32 %v1038_v50, %v1478_v12 }
 0x312   : > { %v1042_v2 = vpop.f32.mrf.mxu1 }
 0x313   : > { %1084 = vst.msk [vmem:[%s1860_s28 + $0x8] sm:$0xff] %vm374_vm0, %v1074_v56  ;;  %v1043_v5 = vadd.f32 %v1179_v52, %v1042_v2 }
 0x314   : > { %v1280_v46 = vpop.f32.mrf.mxu1 }
 0x315   : > { %v1075_v34 = vadd.f32 %v1043_v5, %v1480_v14 }
 0x316   : > { %v1045_v61 = vpop.f32.mrf.mxu1 }
 0x317   : > { %1085 = vst.msk [vmem:[%s1860_s28 + $0x10] sm:$0xff] %vm374_vm0, %v1075_v34  ;;  %v1046_v11 = vadd.f32 %v1179_v52, %v1045_v61 }
 0x318   : > { %v1281_v7 = vpop.f32.mrf.mxu1 }
 0x319   : > { %v1076_v0 = vadd.f32 %v1046_v11, %v1482_v15 }
 0x31b   : > { %v1050_v60 = vpop.f32.mrf.mxu1  ;;  %1086 = vst.msk [vmem:[%s1860_s28 + $0x18] sm:$0xff] %vm374_vm0, %v1076_v0 }
 0x31c   : > { %v1051_v12 = vadd.f32 %v1179_v52, %v1050_v60 }
 0x31d   : > { %v1284_v53 = vpop.f32.mrf.mxu1 }
 0x31e   : > { %v1077_v4 = vadd.f32 %v1051_v12, %v1493_v23 }
 0x31f   : > { %v1053_v18 = vpop.f32.mrf.mxu1 }
 0x320   : > { %1087 = vst.msk [vmem:[%s1860_s28 + $0x20] sm:$0xff] %vm374_vm0, %v1077_v4  ;;  %v1054_v14 = vadd.f32 %v1179_v52, %v1053_v18 }
 0x321   : > { %v1285_v1 = vpop.f32.mrf.mxu1 }
 0x322   : > { %v1078_v21 = vadd.f32 %v1054_v14, %v1497_v26 }
 0x324   : > { %1088 = vst.msk [vmem:[%s1860_s28 + $0x28] sm:$0xff] %vm374_vm0, %v1078_v21 }
 0x326   : > { %v1058_v15 = vpop.f32.mrf.mxu1 }
 0x327   : > { %v1059_v54 = vadd.f32 %v1179_v52, %v1058_v15 }
 0x328   : > { %v1288_v37 = vpop.f32.mrf.mxu1 }
 0x329   : > { %v1079_v28 = vadd.f32 %v1059_v54, %v1504_v32 }
 0x32a   : > { %v1061_v45 = vpop.f32.mrf.mxu1 }
 0x32b   : > { %1089 = vst.msk [vmem:[%s1860_s28 + $0x30] sm:$0xff] %vm374_vm0, %v1079_v28  ;;  %v1062_v23 = vadd.f32 %v1179_v52, %v1061_v45 }
 0x32c   : > { %v1289_v19 = vpop.f32.mrf.mxu1 }
 0x32d   : > { %v1080_v57 = vadd.f32 %v1062_v23, %v1508_v35 }
 0x32f   : > { %1090 = vst.msk [vmem:[%s1860_s28 + $0x38] sm:$0xff] %vm374_vm0, %v1080_v57 }
 0x33a   : > { %v1066_v13 = vpop.f32.mrf.mxu1 }
 0x33b   : > { %v1067_v26 = vadd.f32 %v1179_v52, %v1066_v13 }
 0x33c   : > { %v1292_v6 = vpop.f32.mrf.mxu1 }
 0x33d   : > { %v1081_v31 = vadd.f32 %v1067_v26, %v1514_v40 }
 0x33e   : > { %v1069_v59 = vpop.f32.mrf.mxu1 }
 0x33f   : > { %1091 = vst.msk [vmem:[%s1860_s28 + $0x40] sm:$0xff] %vm374_vm0, %v1081_v31  ;;  %v1070_v20 = vadd.f32 %v1179_v52, %v1069_v59 }
 0x340   : > { %v1293_v32 = vpop.f32.mrf.mxu1 }
 0x341   : > { %v1082_v27 = vadd.f32 %v1070_v20, %v1518_v42 }
 0x343   : > { %1092 = vst.msk [vmem:[%s1860_s28 + $0x48] sm:$0xff] %vm374_vm0, %v1082_v27 }
 0x344 PF: > { %s18_s27 = sadd.s32 1, %s1396_s27  }
 0x345   : > { %p15_p4 = scmp.ge.s32.totalorder %s18_s27, 4  }
 0x347   :  { %17 = sbr.rel (!%p15_p4) target bundleno = 1 (0x1), region = 85 }

</bundles_post_ra>
